<compile_context>
chip_gen: v5e
topology: v5e:2x2
jax: 0.10.0
libtpu: 0.0.40
codegen_flags: <defaults>
</compile_context>

<pallas_src>
import math

import jax
import jax.numpy as jnp
import numpy as np
from jax.experimental import pallas as pl

LN_EPS = 1e-5   # PyTorch nn.LayerNorm default eps
HID = 32        # encoder hidden channels (fixed by the module)


# ---------------------------------- kernel ------------------------------------
def fused_encoder_kernel(x_ref, wt1_ref, wt23_ref, nslab_ref, smat_ref,
                         alin_ref, msel_ref, gq_ref, sselt_ref, blin_ref, o_ref):
    f32 = jnp.float32
    shm = smat_ref[0]      # (BL, BL) row shift giving x_{l-1}, zero at sample starts
    shp = smat_ref[1]      # (BL, BL) row shift giving x_{l+1}, zero at sample ends
    pavg = smat_ref[2]     # (BL, BL) per-sample block average (1/(HID*L) within a sample)

    def conv_ln_relu(h, w0, w1, w2, bias, gamma, beta):
        # h: (BL, Cin); w_k: (Cin, HID); bias/gamma/beta: (BL, HID)
        hm = jnp.dot(shm, h, preferred_element_type=f32)
        hp = jnp.dot(shp, h, preferred_element_type=f32)
        y = (jnp.dot(hm, w0, preferred_element_type=f32)
             + jnp.dot(h, w1, preferred_element_type=f32)
             + jnp.dot(hp, w2, preferred_element_type=f32)
             + bias)
        # per-sample LayerNorm over (L rows x HID lanes), one-pass statistics
        zs = jnp.dot(pavg, y, preferred_element_type=f32)             # (BL, HID)
        zq = jnp.dot(pavg, y * y, preferred_element_type=f32)         # (BL, HID)
        mu = jnp.sum(zs, axis=1, keepdims=True)                       # (BL, 1)  E[y]
        var = jnp.maximum(jnp.sum(zq, axis=1, keepdims=True) - mu * mu, 0.0)
        yn = (y - mu) * jax.lax.rsqrt(var + LN_EPS)
        return jnp.maximum(yn * gamma + beta, 0.0)

    h = x_ref[...].astype(f32)                                        # (BL, Cin)
    h = conv_ln_relu(h, wt1_ref[0], wt1_ref[1], wt1_ref[2],
                     nslab_ref[0, 0], nslab_ref[0, 1], nslab_ref[0, 2])
    h = conv_ln_relu(h, wt23_ref[0, 0], wt23_ref[0, 1], wt23_ref[0, 2],
                     nslab_ref[1, 0], nslab_ref[1, 1], nslab_ref[1, 2])
    h = conv_ln_relu(h, wt23_ref[1, 0], wt23_ref[1, 1], wt23_ref[1, 2],
                     nslab_ref[2, 0], nslab_ref[2, 1], nslab_ref[2, 2])   # (BL, HID)

    # Fused Linear:  out[b, o] = sum_{c,l} W[o, c*L + l] * h[b*L + l, c] + b_lin[o]
    q = jnp.dot(h, alin_ref[...], preferred_element_type=f32)         # (BL, OUT*L)
    y = jnp.dot(q * msel_ref[...], gq_ref[...], preferred_element_type=f32)   # (BL, OUT)
    o_ref[...] = (jnp.dot(sselt_ref[...], y, preferred_element_type=f32)
                  + blin_ref[...])                                    # (B, OUT)


# --------------------------------- wrapper -------------------------------------
def cnn_encoder_forward(x, packed_params, seq_len_future):
    """Equivalent of CNNEncoderModel.forward. Returns (h, hand_last, head_last)."""
    B, c_in, L = x.shape
    wt1, wt23, nslab, smat, alin, msel, gq, sselt, blin = packed_params
    out_ch = gq.shape[1]

    # Layout plumbing only: pack the batch along the sublane axis (B, Cin, L) -> (B*L, Cin)
    # with row b*L + l = x[b, :, l].
    xp = jnp.transpose(x, (0, 2, 1)).reshape(B * L, c_in)

    h_out = pl.pallas_call(
        fused_encoder_kernel,
        out_shape=jax.ShapeDtypeStruct((B, out_ch), jnp.float32),
    )(xp, wt1, wt23, nslab, smat, alin, msel, gq, sselt, blin)

    # glue: pure slicing/broadcast of the last timestep (kept in input dtype).
    hand_last = jnp.broadcast_to(x[:, :6, -1:], (B, 6, seq_len_future))
    head_last = jnp.broadcast_to(x[:, 6:, -1:], (B, c_in - 6, seq_len_future))
    return h_out, hand_last, head_last


# ---------------------------- host-side param packing --------------------------
def pack_params(raw, B, L):
    """Pack raw (PyTorch-layout) parameters into the constant slabs the kernel consumes."""
    (w1, b1, g1, be1, w2, b2, g2, be2, w3, b3, g3, be3, w_lin, b_lin) = raw
    BL = B * L
    out_ch = w_lin.shape[0]

    def pack_conv(w):                  # (HID, Cin, 3) -> (3, Cin, HID), taps [l-1, l, l+1]
        return jnp.transpose(w, (2, 1, 0))

    def norm_slab(b, g, be):           # -> (3, BL, HID): conv bias / LN gamma / LN beta
        return jnp.stack([jnp.broadcast_to(b[None, :], (BL, HID)),
                          jnp.tile(g.T, (B, 1)),
                          jnp.tile(be.T, (B, 1))], axis=0)

    wt1 = pack_conv(w1)                                              # (3, Cin, HID)
    wt23 = jnp.stack([pack_conv(w2), pack_conv(w3)], axis=0)         # (2, 3, HID, HID)
    nslab = jnp.stack([norm_slab(b1, g1, be1),
                       norm_slab(b2, g2, be2),
                       norm_slab(b3, g3, be3)], axis=0)              # (3, 3, BL, HID)

    # Constant selection / averaging matrices (applied on the MXU inside the kernel).
    r = np.arange(BL)
    same = (r[:, None] // L) == (r[None, :] // L)
    shm = ((r[None, :] == r[:, None] - 1) & ((r[:, None] % L) != 0)).astype(np.float32)
    shp = ((r[None, :] == r[:, None] + 1) & ((r[:, None] % L) != (L - 1))).astype(np.float32)
    pavg = same.astype(np.float32) / float(HID * L)
    smat = jnp.asarray(np.stack([shm, shp, pavg], axis=0))           # (3, BL, BL)

    w3d = w_lin.reshape(out_ch, HID, L)                              # w3d[o, c, l] = W[o, c*L+l]
    alin = jnp.transpose(w3d, (1, 0, 2)).reshape(HID, out_ch * L)    # alin[c, o*L + l]

    j = np.arange(out_ch * L)
    msel = jnp.asarray(((j[None, :] % L) == (r[:, None] % L)).astype(np.float32))  # (BL, OUT*L)
    o_idx = np.arange(out_ch)
    gq = jnp.asarray(((j[:, None] // L) == o_idx[None, :]).astype(np.float32))     # (OUT*L, OUT)
    b_idx = np.arange(B)
    sselt = jnp.asarray(((r[None, :] // L) == b_idx[:, None]).astype(np.float32))  # (B, BL)

    return wt1, wt23, nslab, smat, alin, msel, gq, sselt, b_lin.reshape(1, out_ch)


# --------------------------- deterministic raw params ---------------------------
def init_raw_params(key, c_in, L, out_ch):
    ks = jax.random.split(key, 4)

    def conv_p(k, cout, cin):
        bound = 1.0 / math.sqrt(cin * 3)                  # PyTorch Conv1d default scale
        kw, kb = jax.random.split(k)
        w = jax.random.uniform(kw, (cout, cin, 3), jnp.float32, -bound, bound)
        b = jax.random.uniform(kb, (cout,), jnp.float32, -bound, bound)
        return w, b

    w1, b1 = conv_p(ks[0], HID, c_in)
    w2, b2 = conv_p(ks[1], HID, HID)
    w3, b3 = conv_p(ks[2], HID, HID)

    ones = jnp.ones((HID, L), jnp.float32)
    zeros = jnp.zeros((HID, L), jnp.float32)

    fan_in = HID * L
    bound = 1.0 / math.sqrt(fan_in)                       # PyTorch Linear default scale
    kw, kb = jax.random.split(ks[3])
    w_lin = jax.random.uniform(kw, (out_ch, fan_in), jnp.float32, -bound, bound)
    b_lin = jax.random.uniform(kb, (out_ch,), jnp.float32, -bound, bound)

    return (w1, b1, ones, zeros, w2, b2, ones, zeros, w3, b3, ones, zeros, w_lin, b_lin)


# ------------------------------ pure-JAX reference ------------------------------
def reference_forward(x, raw, seq_len_future):
    (w1, b1, g1, be1, w2, b2, g2, be2, w3, b3, g3, be3, w_lin, b_lin) = raw
    hp = jax.lax.Precision.HIGHEST

    def conv(h, w, b):
        y = jax.lax.conv_general_dilated(h, w, window_strides=(1,), padding=((1, 1),),
                                         dimension_numbers=("NCH", "OIH", "NCH"),
                                         precision=hp)
        return y + b[None, :, None]

    def ln(h, g, be):
        mu = jnp.mean(h, axis=(1, 2), keepdims=True)
        var = jnp.mean((h - mu) ** 2, axis=(1, 2), keepdims=True)
        return (h - mu) * jax.lax.rsqrt(var + LN_EPS) * g[None] + be[None]

    h = x.astype(jnp.float32)
    h = jax.nn.relu(ln(conv(h, w1, b1), g1, be1))
    h = jax.nn.relu(ln(conv(h, w2, b2), g2, be2))
    h = jax.nn.relu(ln(conv(h, w3, b3), g3, be3))
    h = jnp.dot(h.reshape(h.shape[0], -1), w_lin.T, precision=hp) + b_lin[None, :]

    B, c_in, _ = x.shape
    hand_last = jnp.broadcast_to(x[:, :6, -1:], (B, 6, seq_len_future))
    head_last = jnp.broadcast_to(x[:, 6:, -1:], (B, c_in - 6, seq_len_future))
    return h, hand_last, head_last


# ------------------------------------ main --------------------------------------
if __name__ == "__main__":
    B, C_IN, L, OUT_CH, SEQ_FUT = 2, 8, 16, 32, 3

    key = jax.random.PRNGKey(0)
    kx, kp = jax.random.split(key)
    x = jax.random.normal(kx, (B, C_IN, L), jnp.float32)

    raw = init_raw_params(kp, C_IN, L, OUT_CH)
    packed = pack_params(raw, B, L)

    h, hand_last, head_last = cnn_encoder_forward(x, packed, SEQ_FUT)
    jax.block_until_ready((h, hand_last, head_last))

    assert h.shape == (B, OUT_CH) and h.dtype == jnp.float32
    assert hand_last.shape == (B, 6, SEQ_FUT)
    assert head_last.shape == (B, C_IN - 6, SEQ_FUT)

    # numerics vs a pure-JAX reference of the PyTorch module
    h_ref, hand_ref, head_ref = reference_forward(x, raw, SEQ_FUT)
    np.testing.assert_allclose(np.asarray(h), np.asarray(h_ref), rtol=1e-3, atol=1e-3)
    np.testing.assert_allclose(np.asarray(hand_last), np.asarray(hand_ref), rtol=0, atol=0)
    np.testing.assert_allclose(np.asarray(head_last), np.asarray(head_ref), rtol=0, atol=0)

    print("KERNEL_OK")
</pallas_src>

<mosaic_0001>
module attributes {stable_mosaic.version = 11 : i64} {
  func.func @fused_encoder_kernel(%arg0: memref<32x8xf32, #tpu.memory_space<vmem>>, %arg1: memref<3x8x32xf32, #tpu.memory_space<vmem>>, %arg2: memref<2x3x32x32xf32, #tpu.memory_space<vmem>>, %arg3: memref<3x3x32x32xf32, #tpu.memory_space<vmem>>, %arg4: memref<3x32x32xf32, #tpu.memory_space<vmem>>, %arg5: memref<32x512xf32, #tpu.memory_space<vmem>>, %arg6: memref<32x512xf32, #tpu.memory_space<vmem>>, %arg7: memref<512x32xf32, #tpu.memory_space<vmem>>, %arg8: memref<2x32xf32, #tpu.memory_space<vmem>>, %arg9: memref<1x32xf32, #tpu.memory_space<vmem>>, %arg10: memref<2x32xf32, #tpu.memory_space<vmem>>) attributes {dimension_semantics = [], scalar_prefetch = 0 : i64, scratch_operands = 0 : i64, tpu.core_type = #tpu.core_type<tc>} {
    %c0 = arith.constant 0 : index
    %c0_0 = arith.constant 0 : index
    %c0_1 = arith.constant 0 : index
    %0 = vector.load %arg4[%c0, %c0_0, %c0_1] : memref<3x32x32xf32, #tpu.memory_space<vmem>>, vector<1x32x32xf32>
    %1 = vector.shape_cast %0 : vector<1x32x32xf32> to vector<32x32xf32>
    %c1 = arith.constant 1 : index
    %c0_2 = arith.constant 0 : index
    %c0_3 = arith.constant 0 : index
    %2 = vector.load %arg4[%c1, %c0_2, %c0_3] : memref<3x32x32xf32, #tpu.memory_space<vmem>>, vector<1x32x32xf32>
    %3 = vector.shape_cast %2 : vector<1x32x32xf32> to vector<32x32xf32>
    %c2 = arith.constant 2 : index
    %c0_4 = arith.constant 0 : index
    %c0_5 = arith.constant 0 : index
    %4 = vector.load %arg4[%c2, %c0_4, %c0_5] : memref<3x32x32xf32, #tpu.memory_space<vmem>>, vector<1x32x32xf32>
    %5 = vector.shape_cast %4 : vector<1x32x32xf32> to vector<32x32xf32>
    %c0_6 = arith.constant 0 : index
    %c0_7 = arith.constant 0 : index
    %6 = vector.load %arg0[%c0_6, %c0_7] : memref<32x8xf32, #tpu.memory_space<vmem>>, vector<32x8xf32>
    %c0_8 = arith.constant 0 : index
    %c0_9 = arith.constant 0 : index
    %c0_10 = arith.constant 0 : index
    %7 = vector.load %arg1[%c0_8, %c0_9, %c0_10] : memref<3x8x32xf32, #tpu.memory_space<vmem>>, vector<1x8x32xf32>
    %8 = vector.shape_cast %7 : vector<1x8x32xf32> to vector<8x32xf32>
    %c1_11 = arith.constant 1 : index
    %c0_12 = arith.constant 0 : index
    %c0_13 = arith.constant 0 : index
    %9 = vector.load %arg1[%c1_11, %c0_12, %c0_13] : memref<3x8x32xf32, #tpu.memory_space<vmem>>, vector<1x8x32xf32>
    %10 = vector.shape_cast %9 : vector<1x8x32xf32> to vector<8x32xf32>
    %c2_14 = arith.constant 2 : index
    %c0_15 = arith.constant 0 : index
    %c0_16 = arith.constant 0 : index
    %11 = vector.load %arg1[%c2_14, %c0_15, %c0_16] : memref<3x8x32xf32, #tpu.memory_space<vmem>>, vector<1x8x32xf32>
    %12 = vector.shape_cast %11 : vector<1x8x32xf32> to vector<8x32xf32>
    %c0_17 = arith.constant 0 : index
    %c0_18 = arith.constant 0 : index
    %c0_19 = arith.constant 0 : index
    %c0_20 = arith.constant 0 : index
    %13 = vector.load %arg3[%c0_17, %c0_18, %c0_19, %c0_20] : memref<3x3x32x32xf32, #tpu.memory_space<vmem>>, vector<1x1x32x32xf32>
    %14 = vector.shape_cast %13 : vector<1x1x32x32xf32> to vector<32x32xf32>
    %c0_21 = arith.constant 0 : index
    %c1_22 = arith.constant 1 : index
    %c0_23 = arith.constant 0 : index
    %c0_24 = arith.constant 0 : index
    %15 = vector.load %arg3[%c0_21, %c1_22, %c0_23, %c0_24] : memref<3x3x32x32xf32, #tpu.memory_space<vmem>>, vector<1x1x32x32xf32>
    %16 = vector.shape_cast %15 : vector<1x1x32x32xf32> to vector<32x32xf32>
    %c0_25 = arith.constant 0 : index
    %c2_26 = arith.constant 2 : index
    %c0_27 = arith.constant 0 : index
    %c0_28 = arith.constant 0 : index
    %17 = vector.load %arg3[%c0_25, %c2_26, %c0_27, %c0_28] : memref<3x3x32x32xf32, #tpu.memory_space<vmem>>, vector<1x1x32x32xf32>
    %18 = vector.shape_cast %17 : vector<1x1x32x32xf32> to vector<32x32xf32>
    %cst = arith.constant dense<0.000000e+00> : vector<32x8xf32>
    %19 = tpu.matmul %1, %6, %cst {dimension_numbers = #tpu.dot_dimension_numbers<[1], [0], [0], [1], [0, 0, 1, 1], [], []>} : vector<32x32xf32>, vector<32x8xf32>, vector<32x8xf32> -> vector<32x8xf32>
    %cst_29 = arith.constant dense<0.000000e+00> : vector<32x8xf32>
    %20 = tpu.matmul %3, %6, %cst_29 {dimension_numbers = #tpu.dot_dimension_numbers<[1], [0], [0], [1], [0, 0, 1, 1], [], []>} : vector<32x32xf32>, vector<32x8xf32>, vector<32x8xf32> -> vector<32x8xf32>
    %cst_30 = arith.constant dense<0.000000e+00> : vector<32x32xf32>
    %21 = tpu.matmul %19, %8, %cst_30 {dimension_numbers = #tpu.dot_dimension_numbers<[1], [0], [0], [1], [0, 0, 1, 1], [], []>} : vector<32x8xf32>, vector<8x32xf32>, vector<32x32xf32> -> vector<32x32xf32>
    %cst_31 = arith.constant dense<0.000000e+00> : vector<32x32xf32>
    %22 = tpu.matmul %6, %10, %cst_31 {dimension_numbers = #tpu.dot_dimension_numbers<[1], [0], [0], [1], [0, 0, 1, 1], [], []>} : vector<32x8xf32>, vector<8x32xf32>, vector<32x32xf32> -> vector<32x32xf32>
    %23 = arith.addf %21, %22 : vector<32x32xf32>
    %cst_32 = arith.constant dense<0.000000e+00> : vector<32x32xf32>
    %24 = tpu.matmul %20, %12, %cst_32 {dimension_numbers = #tpu.dot_dimension_numbers<[1], [0], [0], [1], [0, 0, 1, 1], [], []>} : vector<32x8xf32>, vector<8x32xf32>, vector<32x32xf32> -> vector<32x32xf32>
    %25 = arith.addf %23, %24 : vector<32x32xf32>
    %26 = arith.addf %25, %14 : vector<32x32xf32>
    %cst_33 = arith.constant dense<0.000000e+00> : vector<32x32xf32>
    %27 = tpu.matmul %5, %26, %cst_33 {dimension_numbers = #tpu.dot_dimension_numbers<[1], [0], [0], [1], [0, 0, 1, 1], [], []>} : vector<32x32xf32>, vector<32x32xf32>, vector<32x32xf32> -> vector<32x32xf32>
    %28 = arith.mulf %26, %26 : vector<32x32xf32>
    %cst_34 = arith.constant dense<0.000000e+00> : vector<32x32xf32>
    %29 = tpu.matmul %5, %28, %cst_34 {dimension_numbers = #tpu.dot_dimension_numbers<[1], [0], [0], [1], [0, 0, 1, 1], [], []>} : vector<32x32xf32>, vector<32x32xf32>, vector<32x32xf32> -> vector<32x32xf32>
    %cst_35 = arith.constant dense<0.000000e+00> : vector<32xf32>
    %30 = vector.multi_reduction <add>, %27, %cst_35 [1] : vector<32x32xf32> to vector<32xf32>
    %31 = vector.shape_cast %30 : vector<32xf32> to vector<32x1xf32>
    %cst_36 = arith.constant dense<0.000000e+00> : vector<32xf32>
    %32 = vector.multi_reduction <add>, %29, %cst_36 [1] : vector<32x32xf32> to vector<32xf32>
    %33 = vector.shape_cast %32 : vector<32xf32> to vector<32x1xf32>
    %34 = arith.mulf %31, %31 : vector<32x1xf32>
    %35 = arith.subf %33, %34 : vector<32x1xf32>
    %cst_37 = arith.constant 0.000000e+00 : f32
    %36 = vector.broadcast %cst_37 : f32 to vector<32x1xf32>
    %37 = arith.maximumf %35, %36 : vector<32x1xf32>
    %38 = vector.broadcast %31 : vector<32x1xf32> to vector<32x32xf32>
    %39 = arith.subf %26, %38 : vector<32x32xf32>
    %cst_38 = arith.constant 9.99999974E-6 : f32
    %40 = vector.broadcast %cst_38 : f32 to vector<32x1xf32>
    %41 = arith.addf %37, %40 : vector<32x1xf32>
    %42 = math.rsqrt %41 : vector<32x1xf32>
    %43 = vector.broadcast %42 : vector<32x1xf32> to vector<32x32xf32>
    %44 = arith.mulf %39, %43 : vector<32x32xf32>
    %45 = arith.mulf %44, %16 : vector<32x32xf32>
    %46 = arith.addf %45, %18 : vector<32x32xf32>
    %cst_39 = arith.constant 0.000000e+00 : f32
    %47 = vector.broadcast %cst_39 : f32 to vector<32x32xf32>
    %48 = arith.maximumf %46, %47 : vector<32x32xf32>
    %c0_40 = arith.constant 0 : index
    %c0_41 = arith.constant 0 : index
    %c0_42 = arith.constant 0 : index
    %c0_43 = arith.constant 0 : index
    %49 = vector.load %arg2[%c0_40, %c0_41, %c0_42, %c0_43] : memref<2x3x32x32xf32, #tpu.memory_space<vmem>>, vector<1x1x32x32xf32>
    %50 = vector.shape_cast %49 : vector<1x1x32x32xf32> to vector<32x32xf32>
    %c0_44 = arith.constant 0 : index
    %c1_45 = arith.constant 1 : index
    %c0_46 = arith.constant 0 : index
    %c0_47 = arith.constant 0 : index
    %51 = vector.load %arg2[%c0_44, %c1_45, %c0_46, %c0_47] : memref<2x3x32x32xf32, #tpu.memory_space<vmem>>, vector<1x1x32x32xf32>
    %52 = vector.shape_cast %51 : vector<1x1x32x32xf32> to vector<32x32xf32>
    %c0_48 = arith.constant 0 : index
    %c2_49 = arith.constant 2 : index
    %c0_50 = arith.constant 0 : index
    %c0_51 = arith.constant 0 : index
    %53 = vector.load %arg2[%c0_48, %c2_49, %c0_50, %c0_51] : memref<2x3x32x32xf32, #tpu.memory_space<vmem>>, vector<1x1x32x32xf32>
    %54 = vector.shape_cast %53 : vector<1x1x32x32xf32> to vector<32x32xf32>
    %c1_52 = arith.constant 1 : index
    %c0_53 = arith.constant 0 : index
    %c0_54 = arith.constant 0 : index
    %c0_55 = arith.constant 0 : index
    %55 = vector.load %arg3[%c1_52, %c0_53, %c0_54, %c0_55] : memref<3x3x32x32xf32, #tpu.memory_space<vmem>>, vector<1x1x32x32xf32>
    %56 = vector.shape_cast %55 : vector<1x1x32x32xf32> to vector<32x32xf32>
    %c1_56 = arith.constant 1 : index
    %c1_57 = arith.constant 1 : index
    %c0_58 = arith.constant 0 : index
    %c0_59 = arith.constant 0 : index
    %57 = vector.load %arg3[%c1_56, %c1_57, %c0_58, %c0_59] : memref<3x3x32x32xf32, #tpu.memory_space<vmem>>, vector<1x1x32x32xf32>
    %58 = vector.shape_cast %57 : vector<1x1x32x32xf32> to vector<32x32xf32>
    %c1_60 = arith.constant 1 : index
    %c2_61 = arith.constant 2 : index
    %c0_62 = arith.constant 0 : index
    %c0_63 = arith.constant 0 : index
    %59 = vector.load %arg3[%c1_60, %c2_61, %c0_62, %c0_63] : memref<3x3x32x32xf32, #tpu.memory_space<vmem>>, vector<1x1x32x32xf32>
    %60 = vector.shape_cast %59 : vector<1x1x32x32xf32> to vector<32x32xf32>
    %cst_64 = arith.constant dense<0.000000e+00> : vector<32x32xf32>
    %61 = tpu.matmul %1, %48, %cst_64 {dimension_numbers = #tpu.dot_dimension_numbers<[1], [0], [0], [1], [0, 0, 1, 1], [], []>} : vector<32x32xf32>, vector<32x32xf32>, vector<32x32xf32> -> vector<32x32xf32>
    %cst_65 = arith.constant dense<0.000000e+00> : vector<32x32xf32>
    %62 = tpu.matmul %3, %48, %cst_65 {dimension_numbers = #tpu.dot_dimension_numbers<[1], [0], [0], [1], [0, 0, 1, 1], [], []>} : vector<32x32xf32>, vector<32x32xf32>, vector<32x32xf32> -> vector<32x32xf32>
    %cst_66 = arith.constant dense<0.000000e+00> : vector<32x32xf32>
    %63 = tpu.matmul %61, %50, %cst_66 {dimension_numbers = #tpu.dot_dimension_numbers<[1], [0], [0], [1], [0, 0, 1, 1], [], []>} : vector<32x32xf32>, vector<32x32xf32>, vector<32x32xf32> -> vector<32x32xf32>
    %cst_67 = arith.constant dense<0.000000e+00> : vector<32x32xf32>
    %64 = tpu.matmul %48, %52, %cst_67 {dimension_numbers = #tpu.dot_dimension_numbers<[1], [0], [0], [1], [0, 0, 1, 1], [], []>} : vector<32x32xf32>, vector<32x32xf32>, vector<32x32xf32> -> vector<32x32xf32>
    %65 = arith.addf %63, %64 : vector<32x32xf32>
    %cst_68 = arith.constant dense<0.000000e+00> : vector<32x32xf32>
    %66 = tpu.matmul %62, %54, %cst_68 {dimension_numbers = #tpu.dot_dimension_numbers<[1], [0], [0], [1], [0, 0, 1, 1], [], []>} : vector<32x32xf32>, vector<32x32xf32>, vector<32x32xf32> -> vector<32x32xf32>
    %67 = arith.addf %65, %66 : vector<32x32xf32>
    %68 = arith.addf %67, %56 : vector<32x32xf32>
    %cst_69 = arith.constant dense<0.000000e+00> : vector<32x32xf32>
    %69 = tpu.matmul %5, %68, %cst_69 {dimension_numbers = #tpu.dot_dimension_numbers<[1], [0], [0], [1], [0, 0, 1, 1], [], []>} : vector<32x32xf32>, vector<32x32xf32>, vector<32x32xf32> -> vector<32x32xf32>
    %70 = arith.mulf %68, %68 : vector<32x32xf32>
    %cst_70 = arith.constant dense<0.000000e+00> : vector<32x32xf32>
    %71 = tpu.matmul %5, %70, %cst_70 {dimension_numbers = #tpu.dot_dimension_numbers<[1], [0], [0], [1], [0, 0, 1, 1], [], []>} : vector<32x32xf32>, vector<32x32xf32>, vector<32x32xf32> -> vector<32x32xf32>
    %cst_71 = arith.constant dense<0.000000e+00> : vector<32xf32>
    %72 = vector.multi_reduction <add>, %69, %cst_71 [1] : vector<32x32xf32> to vector<32xf32>
    %73 = vector.shape_cast %72 : vector<32xf32> to vector<32x1xf32>
    %cst_72 = arith.constant dense<0.000000e+00> : vector<32xf32>
    %74 = vector.multi_reduction <add>, %71, %cst_72 [1] : vector<32x32xf32> to vector<32xf32>
    %75 = vector.shape_cast %74 : vector<32xf32> to vector<32x1xf32>
    %76 = arith.mulf %73, %73 : vector<32x1xf32>
    %77 = arith.subf %75, %76 : vector<32x1xf32>
    %cst_73 = arith.constant 0.000000e+00 : f32
    %78 = vector.broadcast %cst_73 : f32 to vector<32x1xf32>
    %79 = arith.maximumf %77, %78 : vector<32x1xf32>
    %80 = vector.broadcast %73 : vector<32x1xf32> to vector<32x32xf32>
    %81 = arith.subf %68, %80 : vector<32x32xf32>
    %cst_74 = arith.constant 9.99999974E-6 : f32
    %82 = vector.broadcast %cst_74 : f32 to vector<32x1xf32>
    %83 = arith.addf %79, %82 : vector<32x1xf32>
    %84 = math.rsqrt %83 : vector<32x1xf32>
    %85 = vector.broadcast %84 : vector<32x1xf32> to vector<32x32xf32>
    %86 = arith.mulf %81, %85 : vector<32x32xf32>
    %87 = arith.mulf %86, %58 : vector<32x32xf32>
    %88 = arith.addf %87, %60 : vector<32x32xf32>
    %cst_75 = arith.constant 0.000000e+00 : f32
    %89 = vector.broadcast %cst_75 : f32 to vector<32x32xf32>
    %90 = arith.maximumf %88, %89 : vector<32x32xf32>
    %c1_76 = arith.constant 1 : index
    %c0_77 = arith.constant 0 : index
    %c0_78 = arith.constant 0 : index
    %c0_79 = arith.constant 0 : index
    %91 = vector.load %arg2[%c1_76, %c0_77, %c0_78, %c0_79] : memref<2x3x32x32xf32, #tpu.memory_space<vmem>>, vector<1x1x32x32xf32>
    %92 = vector.shape_cast %91 : vector<1x1x32x32xf32> to vector<32x32xf32>
    %c1_80 = arith.constant 1 : index
    %c1_81 = arith.constant 1 : index
    %c0_82 = arith.constant 0 : index
    %c0_83 = arith.constant 0 : index
    %93 = vector.load %arg2[%c1_80, %c1_81, %c0_82, %c0_83] : memref<2x3x32x32xf32, #tpu.memory_space<vmem>>, vector<1x1x32x32xf32>
    %94 = vector.shape_cast %93 : vector<1x1x32x32xf32> to vector<32x32xf32>
    %c1_84 = arith.constant 1 : index
    %c2_85 = arith.constant 2 : index
    %c0_86 = arith.constant 0 : index
    %c0_87 = arith.constant 0 : index
    %95 = vector.load %arg2[%c1_84, %c2_85, %c0_86, %c0_87] : memref<2x3x32x32xf32, #tpu.memory_space<vmem>>, vector<1x1x32x32xf32>
    %96 = vector.shape_cast %95 : vector<1x1x32x32xf32> to vector<32x32xf32>
    %c2_88 = arith.constant 2 : index
    %c0_89 = arith.constant 0 : index
    %c0_90 = arith.constant 0 : index
    %c0_91 = arith.constant 0 : index
    %97 = vector.load %arg3[%c2_88, %c0_89, %c0_90, %c0_91] : memref<3x3x32x32xf32, #tpu.memory_space<vmem>>, vector<1x1x32x32xf32>
    %98 = vector.shape_cast %97 : vector<1x1x32x32xf32> to vector<32x32xf32>
    %c2_92 = arith.constant 2 : index
    %c1_93 = arith.constant 1 : index
    %c0_94 = arith.constant 0 : index
    %c0_95 = arith.constant 0 : index
    %99 = vector.load %arg3[%c2_92, %c1_93, %c0_94, %c0_95] : memref<3x3x32x32xf32, #tpu.memory_space<vmem>>, vector<1x1x32x32xf32>
    %100 = vector.shape_cast %99 : vector<1x1x32x32xf32> to vector<32x32xf32>
    %c2_96 = arith.constant 2 : index
    %c2_97 = arith.constant 2 : index
    %c0_98 = arith.constant 0 : index
    %c0_99 = arith.constant 0 : index
    %101 = vector.load %arg3[%c2_96, %c2_97, %c0_98, %c0_99] : memref<3x3x32x32xf32, #tpu.memory_space<vmem>>, vector<1x1x32x32xf32>
    %102 = vector.shape_cast %101 : vector<1x1x32x32xf32> to vector<32x32xf32>
    %cst_100 = arith.constant dense<0.000000e+00> : vector<32x32xf32>
    %103 = tpu.matmul %1, %90, %cst_100 {dimension_numbers = #tpu.dot_dimension_numbers<[1], [0], [0], [1], [0, 0, 1, 1], [], []>} : vector<32x32xf32>, vector<32x32xf32>, vector<32x32xf32> -> vector<32x32xf32>
    %cst_101 = arith.constant dense<0.000000e+00> : vector<32x32xf32>
    %104 = tpu.matmul %3, %90, %cst_101 {dimension_numbers = #tpu.dot_dimension_numbers<[1], [0], [0], [1], [0, 0, 1, 1], [], []>} : vector<32x32xf32>, vector<32x32xf32>, vector<32x32xf32> -> vector<32x32xf32>
    %cst_102 = arith.constant dense<0.000000e+00> : vector<32x32xf32>
    %105 = tpu.matmul %103, %92, %cst_102 {dimension_numbers = #tpu.dot_dimension_numbers<[1], [0], [0], [1], [0, 0, 1, 1], [], []>} : vector<32x32xf32>, vector<32x32xf32>, vector<32x32xf32> -> vector<32x32xf32>
    %cst_103 = arith.constant dense<0.000000e+00> : vector<32x32xf32>
    %106 = tpu.matmul %90, %94, %cst_103 {dimension_numbers = #tpu.dot_dimension_numbers<[1], [0], [0], [1], [0, 0, 1, 1], [], []>} : vector<32x32xf32>, vector<32x32xf32>, vector<32x32xf32> -> vector<32x32xf32>
    %107 = arith.addf %105, %106 : vector<32x32xf32>
    %cst_104 = arith.constant dense<0.000000e+00> : vector<32x32xf32>
    %108 = tpu.matmul %104, %96, %cst_104 {dimension_numbers = #tpu.dot_dimension_numbers<[1], [0], [0], [1], [0, 0, 1, 1], [], []>} : vector<32x32xf32>, vector<32x32xf32>, vector<32x32xf32> -> vector<32x32xf32>
    %109 = arith.addf %107, %108 : vector<32x32xf32>
    %110 = arith.addf %109, %98 : vector<32x32xf32>
    %cst_105 = arith.constant dense<0.000000e+00> : vector<32x32xf32>
    %111 = tpu.matmul %5, %110, %cst_105 {dimension_numbers = #tpu.dot_dimension_numbers<[1], [0], [0], [1], [0, 0, 1, 1], [], []>} : vector<32x32xf32>, vector<32x32xf32>, vector<32x32xf32> -> vector<32x32xf32>
    %112 = arith.mulf %110, %110 : vector<32x32xf32>
    %cst_106 = arith.constant dense<0.000000e+00> : vector<32x32xf32>
    %113 = tpu.matmul %5, %112, %cst_106 {dimension_numbers = #tpu.dot_dimension_numbers<[1], [0], [0], [1], [0, 0, 1, 1], [], []>} : vector<32x32xf32>, vector<32x32xf32>, vector<32x32xf32> -> vector<32x32xf32>
    %cst_107 = arith.constant dense<0.000000e+00> : vector<32xf32>
    %114 = vector.multi_reduction <add>, %111, %cst_107 [1] : vector<32x32xf32> to vector<32xf32>
    %115 = vector.shape_cast %114 : vector<32xf32> to vector<32x1xf32>
    %cst_108 = arith.constant dense<0.000000e+00> : vector<32xf32>
    %116 = vector.multi_reduction <add>, %113, %cst_108 [1] : vector<32x32xf32> to vector<32xf32>
    %117 = vector.shape_cast %116 : vector<32xf32> to vector<32x1xf32>
    %118 = arith.mulf %115, %115 : vector<32x1xf32>
    %119 = arith.subf %117, %118 : vector<32x1xf32>
    %cst_109 = arith.constant 0.000000e+00 : f32
    %120 = vector.broadcast %cst_109 : f32 to vector<32x1xf32>
    %121 = arith.maximumf %119, %120 : vector<32x1xf32>
    %122 = vector.broadcast %115 : vector<32x1xf32> to vector<32x32xf32>
    %123 = arith.subf %110, %122 : vector<32x32xf32>
    %cst_110 = arith.constant 9.99999974E-6 : f32
    %124 = vector.broadcast %cst_110 : f32 to vector<32x1xf32>
    %125 = arith.addf %121, %124 : vector<32x1xf32>
    %126 = math.rsqrt %125 : vector<32x1xf32>
    %127 = vector.broadcast %126 : vector<32x1xf32> to vector<32x32xf32>
    %128 = arith.mulf %123, %127 : vector<32x32xf32>
    %129 = arith.mulf %128, %100 : vector<32x32xf32>
    %130 = arith.addf %129, %102 : vector<32x32xf32>
    %cst_111 = arith.constant 0.000000e+00 : f32
    %131 = vector.broadcast %cst_111 : f32 to vector<32x32xf32>
    %132 = arith.maximumf %130, %131 : vector<32x32xf32>
    %c0_112 = arith.constant 0 : index
    %c0_113 = arith.constant 0 : index
    %133 = vector.load %arg5[%c0_112, %c0_113] : memref<32x512xf32, #tpu.memory_space<vmem>>, vector<32x512xf32>
    %cst_114 = arith.constant dense<0.000000e+00> : vector<32x512xf32>
    %134 = tpu.matmul %132, %133, %cst_114 {dimension_numbers = #tpu.dot_dimension_numbers<[1], [0], [0], [1], [0, 0, 1, 1], [], []>} : vector<32x32xf32>, vector<32x512xf32>, vector<32x512xf32> -> vector<32x512xf32>
    %c0_115 = arith.constant 0 : index
    %c0_116 = arith.constant 0 : index
    %135 = vector.load %arg6[%c0_115, %c0_116] : memref<32x512xf32, #tpu.memory_space<vmem>>, vector<32x512xf32>
    %136 = arith.mulf %134, %135 : vector<32x512xf32>
    %c0_117 = arith.constant 0 : index
    %c0_118 = arith.constant 0 : index
    %137 = vector.load %arg7[%c0_117, %c0_118] : memref<512x32xf32, #tpu.memory_space<vmem>>, vector<512x32xf32>
    %cst_119 = arith.constant dense<0.000000e+00> : vector<32x32xf32>
    %138 = tpu.matmul %136, %137, %cst_119 {dimension_numbers = #tpu.dot_dimension_numbers<[1], [0], [0], [1], [0, 0, 1, 1], [], []>} : vector<32x512xf32>, vector<512x32xf32>, vector<32x32xf32> -> vector<32x32xf32>
    %c0_120 = arith.constant 0 : index
    %c0_121 = arith.constant 0 : index
    %139 = vector.load %arg8[%c0_120, %c0_121] : memref<2x32xf32, #tpu.memory_space<vmem>>, vector<2x32xf32>
    %cst_122 = arith.constant dense<0.000000e+00> : vector<2x32xf32>
    %140 = tpu.matmul %139, %138, %cst_122 {dimension_numbers = #tpu.dot_dimension_numbers<[1], [0], [0], [1], [0, 0, 1, 1], [], []>} : vector<2x32xf32>, vector<32x32xf32>, vector<2x32xf32> -> vector<2x32xf32>
    %c0_123 = arith.constant 0 : index
    %c0_124 = arith.constant 0 : index
    %141 = vector.load %arg9[%c0_123, %c0_124] : memref<1x32xf32, #tpu.memory_space<vmem>>, vector<1x32xf32>
    %142 = vector.broadcast %141 : vector<1x32xf32> to vector<2x32xf32>
    %143 = arith.addf %140, %142 : vector<2x32xf32>
    %c0_125 = arith.constant 0 : index
    %c0_126 = arith.constant 0 : index
    %144 = vector.load %arg10[%c0_125, %c0_126] : memref<2x32xf32, #tpu.memory_space<vmem>>, vector<2x32xf32>
    tpu.vector_store %arg10[%c0_125, %c0_126], %143 {strides = array<i32>} : memref<2x32xf32, #tpu.memory_space<vmem>>, vector<2x32xf32>,
    return
  }
}

</mosaic_0001>

<bundles_post_ra>
// kernel: tpu_custom_call.1
= control target key start
LH: loop header
LB: loop body
LE: loop exit
PB: predicated region body
PF: predicated region fallthrough
CT: control target
= control target key end

     0   :  { %15 = vsyncpa [#allocation3], 0  ;;  %s2795_s0 = inlined_call_operand.vmem [shape: f32[32,8], index: 0, kind: input, shape index: {}]   ;;  %s2796_s1 = inlined_call_operand.vmem [shape: f32[3,8,32], index: 1, kind: input, shape index: {}]   ;;  %s2797_s2 = inlined_call_operand.vmem [shape: f32[2,3,32,32], index: 2, kind: input, shape index: {}]   ;;  %s2798_s3 = inlined_call_operand.vmem [shape: f32[3,3,32,32], index: 3, kind: input, shape index: {}]   ;;  %s2799_s4 = inlined_call_operand.hbm [shape: f32[3,32,32], index: 4, kind: input, shape index: {}]   ;;  %s2800_s5 = inlined_call_operand.vmem [shape: f32[32,512], index: 5, kind: input, shape index: {}]   ;;  %s2801_s6 = inlined_call_operand.hbm [shape: f32[32,512], index: 6, kind: input, shape index: {}]   ;;  %s2802_s7 = inlined_call_operand.vmem [shape: f32[512,32], index: 7, kind: input, shape index: {}]   ;;  %s2803_s8 = inlined_call_operand.vmem [shape: f32[2,32], index: 8, kind: input, shape index: {}]   ;;  %s2804_s9 = inlined_call_operand.vmem [shape: f32[1,32], index: 9, kind: input, shape index: {}]   ;;  %s2805_s10 = inlined_call_operand.hbm [shape: f32[2,32], index: 10, kind: output, shape index: {}]  }
   0x1   :  { %16 = vsyncpa [#allocation6], 0 }
   0x2   :  { %17 = vsyncpa [#allocation4], 0  ;;  %s30_s15 = sshll.u32 %s2799_s4, 4  ;;  %s1929_s16 = smov [#allocation2]   ;;  %s31_s15 = int_to_ptr.hbm [resolvable:$true] %s30_s15 }
   0x3   :  { %s32_s17 = sshll.u32 %s1929_s16, 4  ;;  %s45_s20 = sshll.u32 %s2801_s6, 4  ;;  %s33_s17 = int_to_ptr.vmem [resolvable:$true] %s32_s17  ;;  %s46_s20 = int_to_ptr.hbm [resolvable:$true] %s45_s20 }
   0x4   :  { %s1930_s21 = smov 128   ;;  %s1931_s22 = smov 8  }
   0x5   :  { %38 = dma.hbm_to_vmem [thread:$0]  %s31_s15, 1536, %s33_s17, [#allocation3], %s1930_s21, %s1930_s21, %s1931_s22  }
   0x6   :  { %s1932_s23 = smov [#allocation5]   ;;  %s1933_s25 = smov 512  }
   0x7   :  { %s47_s24 = sshll.u32 %s1932_s23, 4  ;;  %s1934_s26 = smov 32   ;;  %s48_s24 = int_to_ptr.vmem [resolvable:$true] %s47_s24 }
   0x8   :  { %53 = dma.hbm_to_vmem [thread:$0]  %s46_s20, 2048, %s48_s24, [#allocation6], %s1933_s25, %s1933_s25, %s1934_s26  }
   0x9   :  { %1923 = dma.done.wait [#allocation3], 1536  }
   0xa   :  { %1924 = vsyncadd [#allocation3], 4294965760 }
   0xb   :  { %1925 = dma.done.wait [#allocation6], 2048  }
   0xc   :  { %1926 = vsyncadd [#allocation6], 4294965248  ;;  %v85_v0 = vld [vmem:[%s2795_s0 + $0x18] sm:$0xff]  ;;  %v84_v1 = vld [vmem:[%s2795_s0 + $0x10] sm:$0xff]  ;;  %vm105_vm0 = vcmask 261120   ;;  %vm188_vm1 = vcmask 64512  }
   0xd   :  { %130 = vmatpush.msra.mxu0 %v85_v0  ;;  %1814 = vmatpush.msra.mxu1 %v85_v0  ;;  %v83_v2 = vld [vmem:[%s2795_s0 + $0x8] sm:$0xff]  ;;  %v82_v3 = vld [vmem:[%s2795_s0] sm:$0xff]  ;;  %v2011_v5 = vld [vmem:[#allocation2 + $0x18] sm:$0xff]  ;;  %s1935_s20 = smov [#allocation7]   ;;  %s1648_s24 = sshll.u32 %s2805_s10, 4  ;;  %s1649_s24 = int_to_ptr.hbm [resolvable:$true] %s1648_s24 }
   0xe   :  { %v2009_v4 = vld [vmem:[#allocation2] sm:$0xff]  ;;  %v1659_v6 = vld [vmem:[%s2796_s1 + $0x8] sm:$0xff]  ;;  %v2030_v9 = vld [vmem:[#allocation2 + $0x10] sm:$0xff]  ;;  %s1646_s21 = sshll.u32 %s1935_s20, 4  ;;  %s1647_s21 = int_to_ptr.vmem [resolvable:$true] %s1646_s21 }
   0xf   :  { %131 = vmatpush.msra.mxu0 %v84_v1  ;;  %1815 = vmatpush.msra.mxu1 %v84_v1  ;;  %v2021_v7 = vld [vmem:[#allocation2 + $0x8] sm:$0xff]  ;;  %v2023_v8 = vld [vmem:[#allocation2 + $0x20] sm:$0xff]  ;;  %v2038_v11 = vld [vmem:[#allocation2 + $0x30] sm:$0xff] }
  0x10   :  { %1818 = vmatpush.msra.mxu2 %v1659_v6  ;;  %v2032_v10 = vld [vmem:[#allocation2 + $0x28] sm:$0xff]  ;;  %v2043_v12 = vld [vmem:[#allocation2 + $0x38] sm:$0xff]  ;;  %v86_v13 = vld [vmem:[%s2796_s1] sm:$0xff] }
  0x11   :  { %132 = vmatpush.msra.mxu0 %v83_v2  ;;  %1816 = vmatpush.msra.mxu1 %v83_v2  ;;  %v1660_v14 = vld [vmem:[%s2796_s1 + $0x10] sm:$0xff]  ;;  %v94_v40 = vld [vmem:[%s2798_s3 + $0x18] sm:$0xff]  ;;  %v92_v44 = vld [vmem:[%s2798_s3 + $0x8] sm:$0xff] }
  0x12   :  { %1679 = vmatmul.msk.f32.vlgmr.msra.gmra.mxu2 %vm188_vm1, %v84_v1  ;;  %257 = vmatpush.msra.mxu3 %v86_v13  ;;  %v93_v39 = vld [vmem:[%s2798_s3 + $0x10] sm:$0xff]  ;;  %v91_v48 = vld [vmem:[%s2798_s3] sm:$0xff]  ;;  %v2100_v56 = vld [vmem:[#allocation2 + $0x48] sm:$0xff] }
  0x13   :  { %133 = vmatpush.msra.mxu0 %v82_v3  ;;  %1817 = vmatpush.msra.mxu1 %v82_v3  ;;  %v2091_v54 = vld [vmem:[#allocation2 + $0x40] sm:$0xff]  ;;  %v2106_v57 = vld [vmem:[#allocation2 + $0x50] sm:$0xff]  ;;  %v2112_v58 = vld [vmem:[#allocation2 + $0x58] sm:$0xff] }
  0x14   :  { %1669 = vmatmul.msk.f32.vlgmr.msra.gmra.mxu0 %vm105_vm0, %v2009_v4  ;;  %1672 = vmatmul.msk.f32.vlgmr.msra.gmra.mxu1 %vm105_vm0, %v2011_v5 }
  0x15   :  { %171 = vmatpush.msrb.mxu1 %v85_v0  ;;  %216 = vmatpush.msrb.mxu0 %v1659_v6 }
  0x16   :  { %298 = vmatpush.msrb.mxu2 %v1660_v14 }
  0x17   :  { %172 = vmatpush.msrb.mxu1 %v84_v1 }
  0x19   :  { %173 = vmatpush.msrb.mxu1 %v83_v2 }
  0x1a   :  { %1680 = vmatmul.msk.f32.gmra.mxu2 %vm188_vm1, %v85_v0 }
  0x1b   :  { %174 = vmatpush.msrb.mxu1 %v82_v3 }
  0x1c   :  { %1670 = vmatmul.msk.f32.gmra.mxu0 %vm105_vm0, %v2021_v7  ;;  %1673 = vmatmul.msk.f32.vlgmr.msrb.gmra.mxu1 %vm105_vm0, %v2023_v8 }
  0x24   :  { %1671 = vmatmul.msk.f32.gmra.mxu0 %vm105_vm0, %v2030_v9  ;;  %1674 = vmatmul.msk.f32.gmra.mxu1 %vm105_vm0, %v2032_v10 }
  0x2c   :  { %1675 = vmatmul.msk.f32.gmra.mxu1 %vm105_vm0, %v2038_v11  ;;  %1677 = vmatmul.msk.f32.vlgmr.msrb.gmra.mxu0 %vm188_vm1, %v82_v3 }
  0x34   :  { %1676 = vmatmul.msk.f32.gmra.mxu1 %vm105_vm0, %v2043_v12  ;;  %1678 = vmatmul.msk.f32.gmra.mxu0 %vm188_vm1, %v83_v2 }
  0x91   :  { %v135_v15 = vpop.f32.mrf.mxu0  ;;  %v144_v16 = vpop.f32.mrf.mxu1 }
  0x92   :  { %1681 = vmatmul.msk.f32.vlgmr.msra.gmra.mxu3 %vm188_vm1, %v135_v15 }
  0x95   :  { %v224_v23 = vpop.f32.mrf.mxu2 }
  0x99   :  { %v138_v17 = vpop.f32.mrf.mxu0  ;;  %v176_v18 = vpop.f32.mrf.mxu1 }
  0x9a   :  { %1682 = vmatmul.msk.f32.gmra.mxu3 %vm188_vm1, %v138_v17  ;;  %1685 = vmatmul.msk.f32.vlgmr.msrb.gmra.mxu2 %vm188_vm1, %v176_v18 }
  0x9d   :  { %v227_v24 = vpop.f32.mrf.mxu2 }
  0xa1   :  { %v141_v19 = vpop.f32.mrf.mxu0  ;;  %v179_v20 = vpop.f32.mrf.mxu1 }
  0xa2   :  { %1683 = vmatmul.msk.f32.gmra.mxu3 %vm188_vm1, %v141_v19  ;;  %1686 = vmatmul.msk.f32.gmra.mxu2 %vm188_vm1, %v179_v20 }
  0xa9   :  { %v182_v21 = vpop.f32.mrf.mxu1  ;;  %v218_v28 = vpop.f32.mrf.mxu0 }
  0xaa   :  { %1684 = vmatmul.msk.f32.gmra.mxu3 %vm188_vm1, %v144_v16  ;;  %1687 = vmatmul.msk.f32.gmra.mxu2 %vm188_vm1, %v182_v21 }
  0xb1   :  { %v185_v22 = vpop.f32.mrf.mxu1  ;;  %v221_v32 = vpop.f32.mrf.mxu0 }
  0xb2   :  { %1688 = vmatmul.msk.f32.gmra.mxu2 %vm188_vm1, %v185_v22 }
 0x115   :  { %v259_v25 = vpop.f32.mrf.mxu3 }
 0x116   :  { %v260_v36 = vadd.f32 %v259_v25, %v218_v28  ;;  %v1699_v28 = vld [vmem:[%s2797_s2 + $0x30] sm:$0xff] }
 0x11d   :  { %v262_v26 = vpop.f32.mrf.mxu3  ;;  %v300_v27 = vpop.f32.mrf.mxu2 }
 0x11e   :  { %v263_v34 = vadd.f32 %v262_v26, %v221_v32  ;;  %v312_v45 = vadd.f32 %v300_v27, %v260_v36  ;;  %v1700_v26 = vld [vmem:[%s2797_s2 + $0x38] sm:$0xff] }
 0x120   :  { %v2083_v51 = vadd.f32 %v312_v45, %v91_v48 }
 0x122   :  { %v361_v55 = vmul.f32 %v2083_v51, %v2083_v51 }
 0x125   :  { %v303_v29 = vpop.f32.mrf.mxu2  ;;  %v265_v30 = vpop.f32.mrf.mxu3 }
 0x126   :  { %v266_v35 = vadd.f32 %v265_v30, %v224_v23  ;;  %v313_v42 = vadd.f32 %v303_v29, %v263_v34 }
 0x128   :  { %v2078_v49 = vadd.f32 %v313_v42, %v92_v44 }
 0x12a   :  { %v362_v53 = vmul.f32 %v2078_v49, %v2078_v49 }
 0x12d   :  { %v306_v31 = vpop.f32.mrf.mxu2  ;;  %v268_v33 = vpop.f32.mrf.mxu3 }
 0x12e   :  { %v269_v37 = vadd.f32 %v268_v33, %v227_v24  ;;  %v314_v38 = vadd.f32 %v306_v31, %v266_v35  ;;  %v1698_v31 = vld [vmem:[%s2797_s2 + $0x28] sm:$0xff]  ;;  %v1697_v35 = vld [vmem:[%s2797_s2 + $0x20] sm:$0xff] }
 0x130   :  { %v2071_v46 = vadd.f32 %v314_v38, %v93_v39 }
 0x132   :  { %v363_v52 = vmul.f32 %v2071_v46, %v2071_v46 }
 0x135   :  { %v309_v41 = vpop.f32.mrf.mxu2 }
 0x136   :  { %v315_v43 = vadd.f32 %v309_v41, %v269_v37 }
 0x138   :  { %v2073_v47 = vadd.f32 %v315_v43, %v94_v40 }
 0x13a   :  { %344 = vmatpush.msrb.mxu3 %v2073_v47  ;;  %v364_v50 = vmul.f32 %v2073_v47, %v2073_v47 }
 0x13c   :  { %345 = vmatpush.msrb.mxu3 %v2071_v46  ;;  %377 = vmatpush.msra.mxu0 %v364_v50 }
 0x13e   :  { %346 = vmatpush.msrb.mxu3 %v2078_v49  ;;  %378 = vmatpush.msra.mxu0 %v363_v52 }
 0x140   :  { %347 = vmatpush.msrb.mxu3 %v2083_v51  ;;  %379 = vmatpush.msra.mxu0 %v362_v53 }
 0x141   :  { %1689 = vmatmul.msk.f32.vlgmr.msrb.gmra.mxu3 %vm105_vm0, %v2091_v54 }
 0x142   :  { %380 = vmatpush.msra.mxu0 %v361_v55  ;;  %605 = vmatpush.msra.mxu3 %v1700_v26 }
 0x143   :  { %1693 = vmatmul.msk.f32.vlgmr.msra.gmra.mxu0 %vm105_vm0, %v2091_v54 }
 0x144   :  { %606 = vmatpush.msra.mxu3 %v1699_v28 }
 0x146   :  { %607 = vmatpush.msra.mxu3 %v1698_v31 }
 0x148   :  { %608 = vmatpush.msra.mxu3 %v1697_v35  ;;  %v1667_v35 = vld [vmem:[%s2798_s3 + $0x50] sm:$0xff] }
 0x149   :  { %1690 = vmatmul.msk.f32.gmra.mxu3 %vm105_vm0, %v2100_v56 }
 0x14b   :  { %1694 = vmatmul.msk.f32.gmra.mxu0 %vm105_vm0, %v2100_v56 }
 0x151   :  { %1691 = vmatmul.msk.f32.gmra.mxu3 %vm105_vm0, %v2106_v57 }
 0x153   :  { %1695 = vmatmul.msk.f32.gmra.mxu0 %vm105_vm0, %v2106_v57 }
 0x159   :  { %1692 = vmatmul.msk.f32.gmra.mxu3 %vm105_vm0, %v2112_v58 }
 0x15b   :  { %1696 = vmatmul.msk.f32.gmra.mxu0 %vm105_vm0, %v2112_v58 }
 0x1c0   :  { %v382_v59 = vpop.f32.mrf.mxu0 }
 0x1c1   :  { %v406_v17 = vsel %vm105_vm0, %v382_v59, 0.0 }
 0x1c4   :  { %v349_v60 = vpop.f32.mrf.mxu3 }
 0x1c5   :  { %v394_v13 = vsel %vm105_vm0, %v349_v60, 0.0 }
 0x1c8   :  { %v385_v61 = vpop.f32.mrf.mxu0 }
 0x1c9   :  { %v409_v18 = vsel %vm105_vm0, %v385_v61, 0.0 }
 0x1cc   :  { %v352_v62 = vpop.f32.mrf.mxu3 }
 0x1cd   :  { %v397_v63 = vsel %vm105_vm0, %v352_v62, 0.0 }
 0x1ce   :  { %398 = vadd.xlane.f32.xlu1 %v397_v63 }
 0x1d0   :  { %v388_v0 = vpop.f32.mrf.mxu0 }
 0x1d1   :  { %v412_v1 = vsel %vm105_vm0, %v388_v0, 0.0 }
 0x1d2   :  { %413 = vadd.xlane.f32.xlu2 %v412_v1 }
 0x1d4   :  { %v355_v2 = vpop.f32.mrf.mxu3 }
 0x1d5   :  { %v400_v3 = vsel %vm105_vm0, %v355_v2, 0.0 }
 0x1d6   :  { %401 = vadd.xlane.f32.xlu0 %v400_v3 }
 0x1d8   :  { %v391_v6 = vpop.f32.mrf.mxu0 }
 0x1d9   :  { %v415_v14 = vsel %vm105_vm0, %v391_v6, 0.0 }
 0x1da   :  { %395 = vadd.xlane.f32.xlu2 %v394_v13  ;;  %416 = vadd.xlane.f32.xlu1 %v415_v14 }
 0x1dc   :  { %v358_v15 = vpop.f32.mrf.mxu3 }
 0x1dd   :  { %v403_v16 = vsel %vm105_vm0, %v358_v15, 0.0 }
 0x1de   :  { %404 = vadd.xlane.f32.xlu0 %v403_v16 }
 0x1e2   :  { %407 = vadd.xlane.f32.xlu1 %v406_v17 }
 0x1e6   :  { %410 = vadd.xlane.f32.xlu0 %v409_v18 }
 0x241   :  { %v2126_v19 = vpop.xlane.xlu1 %398 }
 0x242   :  { %v419_v40 = vmul.f32 %v2126_v19, %v2126_v19 }
 0x245   :  { %v414_v20 = vpop.xlane.xlu2 %413 }
 0x249   :  { %v402_v21 = vpop.xlane.xlu0 %401 }
 0x24a   :  { %v420_v22 = vmul.f32 %v402_v21, %v402_v21  ;;  %v432_v14 = vsub.f32 %v2071_v46, %v402_v21  ;;  %v1664_v46 = vld [vmem:[%s2798_s3 + $0x38] sm:$0xff] }
 0x24c   :  { %v424_v23 = vsub.f32 %v414_v20, %v420_v22  ;;  %v1663_v20 = vld [vmem:[%s2798_s3 + $0x30] sm:$0xff] }
 0x24d   :  { %v417_v24 = vpop.xlane.xlu1 %416  ;;  %v2134_v29 = vpop.xlane.xlu2 %395 }
 0x24e   :  { %v428_v25 = vmax.f32 %v424_v23, 0.0  ;;  %v418_v33 = vmul.f32 %v2134_v29, %v2134_v29  ;;  %v430_v31 = vsub.f32 %v2083_v51, %v2134_v29  ;;  %v1665_v29 = vld [vmem:[%s2798_s3 + $0x40] sm:$0xff] }
 0x250   :  { %v436_v27 = vadd.f32 1e-05, %v428_v25 }
 0x251   :  { %v2136_v30 = vpop.xlane.xlu0 %404 }
 0x252   :  { %1827 = vrsqrt.f32 %v436_v27  ;;  %v421_v32 = vmul.f32 %v2136_v30, %v2136_v30  ;;  %vm464_vm3 = vweird.f32 %v436_v27  ;;  %v433_v25 = vsub.f32 %v2073_v47, %v2136_v30  ;;  %v1661_v47 = vld [vmem:[%s2798_s3 + $0x20] sm:$0xff] }
 0x254   :  { %v425_v34 = vsub.f32 %v417_v24, %v421_v32 }
 0x255   :  { %v408_v36 = vpop.xlane.xlu1 %407 }
 0x256   :  { %v429_v37 = vmax.f32 %v425_v34, 0.0  ;;  %v422_v38 = vsub.f32 %v408_v36, %v418_v33  ;;  %v1668_v33 = vld [vmem:[%s2798_s3 + $0x58] sm:$0xff] }
 0x258   :  { %v1828_v39 = vpop.eup %1827  ;;  %v437_v41 = vadd.f32 1e-05, %v429_v37  ;;  %v426_v42 = vmax.f32 %v422_v38, 0.0  ;;  %v431_v38 = vsub.f32 %v2078_v49, %v2126_v19 }
 0x259   :  { %v459_v43 = vmul.f32 %v1828_v39, %v436_v27  ;;  %v411_v44 = vpop.xlane.xlu0 %410  ;;  %vm465_vm2 = vweird.f32 %v1828_v39 }
 0x25a   :  { %1829 = vrsqrt.f32 %v437_v41  ;;  %v434_v45 = vadd.f32 1e-05, %v426_v42  ;;  %v423_v48 = vsub.f32 %v411_v44, %v419_v40  ;;  %vm466_vm4 = vmor %vm464_vm3, %vm465_vm2  ;;  %vm474_vm6 = vweird.f32 %v437_v41 }
 0x25b   :  { %v460_v50 = vmul.f32 %v1828_v39, %v459_v43  ;;  %v1662_v43 = vld [vmem:[%s2798_s3 + $0x28] sm:$0xff] }
 0x25c   :  { %1831 = vrsqrt.f32 %v434_v45  ;;  %v427_v52 = vmax.f32 %v423_v48, 0.0  ;;  %vm444_vm9 = vweird.f32 %v434_v45 }
 0x25d   :  { %v461_v53 = vmul.f32 0.5, %v460_v50  ;;  %v1666_v50 = vld [vmem:[%s2798_s3 + $0x48] sm:$0xff] }
 0x25e   :  { %v435_v55 = vadd.f32 1e-05, %v427_v52 }
 0x25f   :  { %v462_v59 = vsub.f32 1.5, %v461_v53  ;;  %v497_v53 = vld [vmem:[%s2797_s2 + $0x18] sm:$0xff] }
 0x260   :  { %v1830_v60 = vpop.eup %1829  ;;  %1833 = vrsqrt.f32 %v435_v55  ;;  %vm454_vm12 = vweird.f32 %v435_v55  ;;  %646 = vmatpush.msrb.mxu0 %v497_v53 }
 0x261   :  { %v463_v61 = vmul.f32 %v1828_v39, %v462_v59  ;;  %v469_v62 = vmul.f32 %v1830_v60, %v437_v41  ;;  %vm475_vm5 = vweird.f32 %v1830_v60  ;;  %v496_v59 = vld [vmem:[%s2797_s2 + $0x10] sm:$0xff] }
 0x262   :  { %v1832_v63 = vpop.eup %1831  ;;  %vm476_vm8 = vmor %vm474_vm6, %vm475_vm5  ;;  %647 = vmatpush.msrb.mxu0 %v496_v59 }
 0x263   :  { %v470_v0 = vmul.f32 %v1830_v60, %v469_v62  ;;  %v439_v1 = vmul.f32 %v1832_v63, %v434_v45  ;;  %v467_v2 = vsel %vm466_vm4, %v1828_v39, %v463_v61  ;;  %vm445_vm7 = vweird.f32 %v1832_v63  ;;  %v495_v61 = vld [vmem:[%s2797_s2 + $0x8] sm:$0xff]  ;;  %v494_v62 = vld [vmem:[%s2797_s2] sm:$0xff] }
 0x264   :  { %v480_v18 = vmul.f32 %v467_v2, %v432_v14  ;;  %vm446_vm10 = vmor %vm444_vm9, %vm445_vm7  ;;  %648 = vmatpush.msrb.mxu0 %v495_v61  ;;  %v1701_v2 = vld [vmem:[%s2797_s2 + $0x40] sm:$0xff] }
 0x265   :  { %v471_v3 = vmul.f32 0.5, %v470_v0  ;;  %v440_v6 = vmul.f32 %v1832_v63, %v439_v1  ;;  %v1703_v0 = vld [vmem:[%s2797_s2 + $0x50] sm:$0xff]  ;;  %v1702_v1 = vld [vmem:[%s2797_s2 + $0x48] sm:$0xff] }
 0x266   :  { %v1834_v13 = vpop.eup %1833  ;;  %v484_v28 = vmul.f32 %v1663_v20, %v480_v18  ;;  %649 = vmatpush.msrb.mxu0 %v494_v62 }
 0x267   :  { %v472_v15 = vsub.f32 1.5, %v471_v3  ;;  %v441_v16 = vmul.f32 0.5, %v440_v6  ;;  %v449_v17 = vmul.f32 %v1834_v13, %v435_v55  ;;  %vm455_vm11 = vweird.f32 %v1834_v13 }
 0x268   :  { %vm456_vm13 = vmor %vm454_vm12, %vm455_vm11  ;;  %v488_v41 = vadd.f32 %v1667_v35, %v484_v28  ;;  %v1708_v35 = vld [vmem:[%s2798_s3 + $0x78] sm:$0xff] }
 0x269   :  { %v473_v22 = vmul.f32 %v1830_v60, %v472_v15  ;;  %v442_v23 = vsub.f32 1.5, %v441_v16  ;;  %v450_v24 = vmul.f32 %v1834_v13, %v449_v17 }
 0x26a   :  { %v492_v52 = vmax.f32 %v488_v41, 0.0 }
 0x26b   :  { %v477_v21 = vsel %vm476_vm8, %v1830_v60, %v473_v22  ;;  %v443_v26 = vmul.f32 %v1832_v63, %v442_v23  ;;  %v451_v27 = vmul.f32 0.5, %v450_v24 }
 0x26c   :  { %v481_v32 = vmul.f32 %v477_v21, %v433_v25 }
 0x26d   :  { %v447_v30 = vsel %vm446_vm10, %v1832_v63, %v443_v26  ;;  %v452_v34 = vsub.f32 1.5, %v451_v27  ;;  %v1704_v63 = vld [vmem:[%s2797_s2 + $0x58] sm:$0xff] }
 0x26e   :  { %v485_v36 = vmul.f32 %v1664_v46, %v481_v32  ;;  %v478_v37 = vmul.f32 %v447_v30, %v430_v31 }
 0x26f   :  { %v453_v51 = vmul.f32 %v1834_v13, %v452_v34  ;;  %v1707_v34 = vld [vmem:[%s2798_s3 + $0x70] sm:$0xff] }
 0x270   :  { %v489_v39 = vadd.f32 %v1668_v33, %v485_v36  ;;  %v482_v40 = vmul.f32 %v1661_v47, %v478_v37 }
 0x271   :  { %v457_v42 = vsel %vm456_vm13, %v1834_v13, %v453_v51 }
 0x272   :  { %v493_v44 = vmax.f32 %v489_v39, 0.0  ;;  %v486_v45 = vadd.f32 %v1665_v29, %v482_v40  ;;  %v479_v48 = vmul.f32 %v457_v42, %v431_v38  ;;  %v1706_v38 = vld [vmem:[%s2798_s3 + $0x68] sm:$0xff]  ;;  %v1705_v42 = vld [vmem:[%s2798_s3 + $0x60] sm:$0xff] }
 0x274   :  { %535 = vmatpush.msra.mxu1 %v493_v44  ;;  %564 = vmatpush.msra.mxu2 %v493_v44  ;;  %v490_v49 = vmax.f32 %v486_v45, 0.0  ;;  %v483_v19 = vmul.f32 %v1662_v43, %v479_v48 }
 0x276   :  { %536 = vmatpush.msra.mxu1 %v492_v52  ;;  %565 = vmatpush.msra.mxu2 %v492_v52  ;;  %v487_v55 = vadd.f32 %v1666_v50, %v483_v19 }
 0x277   :  { %1725 = vmatmul.msk.f32.vlgmr.msra.gmra.mxu3 %vm105_vm0, %v490_v49 }
 0x278   :  { %v491_v60 = vmax.f32 %v487_v55, 0.0 }
 0x27a   :  { %537 = vmatpush.msra.mxu1 %v491_v60  ;;  %566 = vmatpush.msra.mxu2 %v491_v60 }
 0x27c   :  { %538 = vmatpush.msra.mxu1 %v490_v49  ;;  %567 = vmatpush.msra.mxu2 %v490_v49 }
 0x27d   :  { %1717 = vmatmul.msk.f32.vlgmr.msra.gmra.mxu1 %vm105_vm0, %v2009_v4  ;;  %1721 = vmatmul.msk.f32.vlgmr.msra.gmra.mxu2 %vm105_vm0, %v2023_v8 }
 0x27e   :  { %687 = vmatpush.msrb.mxu1 %v1704_v63 }
 0x27f   :  { %1726 = vmatmul.msk.f32.gmra.mxu3 %vm105_vm0, %v491_v60 }
 0x280   :  { %688 = vmatpush.msrb.mxu1 %v1703_v0 }
 0x282   :  { %689 = vmatpush.msrb.mxu1 %v1702_v1 }
 0x284   :  { %690 = vmatpush.msrb.mxu1 %v1701_v2 }
 0x285   :  { %1718 = vmatmul.msk.f32.gmra.mxu1 %vm105_vm0, %v2021_v7  ;;  %1722 = vmatmul.msk.f32.gmra.mxu2 %vm105_vm0, %v2032_v10 }
 0x287   :  { %1727 = vmatmul.msk.f32.gmra.mxu3 %vm105_vm0, %v492_v52 }
 0x28d   :  { %1719 = vmatmul.msk.f32.gmra.mxu1 %vm105_vm0, %v2030_v9  ;;  %1723 = vmatmul.msk.f32.gmra.mxu2 %vm105_vm0, %v2038_v11 }
 0x28f   :  { %1728 = vmatmul.msk.f32.gmra.mxu3 %vm105_vm0, %v493_v44 }
 0x295   :  { %1720 = vmatmul.msk.f32.gmra.mxu1 %vm105_vm0, %v2011_v5  ;;  %1724 = vmatmul.msk.f32.gmra.mxu2 %vm105_vm0, %v2043_v12 }
 0x2fa   :  { %v540_v3 = vpop.f32.mrf.mxu1  ;;  %v610_v20 = vpop.f32.mrf.mxu3 }
 0x2fb   :  { %1729 = vmatmul.msk.f32.vlgmr.msrb.gmra.mxu0 %vm105_vm0, %v540_v3 }
 0x300   :  { %v569_v6 = vpop.f32.mrf.mxu2 }
 0x301   :  { %1733 = vmatmul.msk.f32.vlgmr.msrb.gmra.mxu1 %vm105_vm0, %v569_v6 }
 0x302   :  { %v543_v13 = vpop.f32.mrf.mxu1  ;;  %v613_v24 = vpop.f32.mrf.mxu3 }
 0x303   :  { %1730 = vmatmul.msk.f32.gmra.mxu0 %vm105_vm0, %v543_v13 }
 0x308   :  { %v572_v14 = vpop.f32.mrf.mxu2 }
 0x309   :  { %1734 = vmatmul.msk.f32.gmra.mxu1 %vm105_vm0, %v572_v14 }
 0x30a   :  { %v546_v15 = vpop.f32.mrf.mxu1  ;;  %v616_v26 = vpop.f32.mrf.mxu3 }
 0x30b   :  { %1731 = vmatmul.msk.f32.gmra.mxu0 %vm105_vm0, %v546_v15 }
 0x310   :  { %v575_v16 = vpop.f32.mrf.mxu2 }
 0x311   :  { %1735 = vmatmul.msk.f32.gmra.mxu1 %vm105_vm0, %v575_v16 }
 0x312   :  { %v549_v17 = vpop.f32.mrf.mxu1  ;;  %v619_v32 = vpop.f32.mrf.mxu3 }
 0x313   :  { %1732 = vmatmul.msk.f32.gmra.mxu0 %vm105_vm0, %v549_v17 }
 0x318   :  { %v578_v18 = vpop.f32.mrf.mxu2 }
 0x319   :  { %1736 = vmatmul.msk.f32.gmra.mxu1 %vm105_vm0, %v578_v18 }
 0x378   :  { %v651_v22 = vpop.f32.mrf.mxu0 }
 0x379   :  { %v652_v37 = vadd.f32 %v651_v22, %v610_v20 }
 0x37e   :  { %v692_v23 = vpop.f32.mrf.mxu1 }
 0x37f   :  { %v704_v39 = vadd.f32 %v692_v23, %v652_v37 }
 0x380   :  { %v654_v25 = vpop.f32.mrf.mxu0 }
 0x381   :  { %v655_v33 = vadd.f32 %v654_v25, %v613_v24  ;;  %v2254_v45 = vadd.f32 %v1705_v42, %v704_v39 }
 0x383   :  { %v741_v52 = vmul.f32 %v2254_v45, %v2254_v45 }
 0x386   :  { %v695_v46 = vpop.f32.mrf.mxu1 }
 0x387   :  { %v705_v51 = vadd.f32 %v695_v46, %v655_v33 }
 0x388   :  { %v657_v21 = vpop.f32.mrf.mxu0 }
 0x389   :  { %v658_v31 = vadd.f32 %v657_v21, %v616_v26  ;;  %v2249_v43 = vadd.f32 %v1706_v38, %v705_v51 }
 0x38b   :  { %v742_v50 = vmul.f32 %v2249_v43, %v2249_v43 }
 0x38e   :  { %v698_v27 = vpop.f32.mrf.mxu1 }
 0x38f   :  { %v706_v47 = vadd.f32 %v698_v27, %v658_v31  ;;  %v1752_v27 = vld [vmem:[%s2797_s2 + $0x98] sm:$0xff] }
 0x390   :  { %v660_v28 = vpop.f32.mrf.mxu0 }
 0x391   :  { %v661_v30 = vadd.f32 %v660_v28, %v619_v32  ;;  %v2242_v40 = vadd.f32 %v1707_v34, %v706_v47  ;;  %v1751_v32 = vld [vmem:[%s2797_s2 + $0x90] sm:$0xff] }
 0x393   :  { %v743_v48 = vmul.f32 %v2242_v40, %v2242_v40 }
 0x396   :  { %v701_v36 = vpop.f32.mrf.mxu1 }
 0x397   :  { %v707_v29 = vadd.f32 %v701_v36, %v661_v30  ;;  %v1750_v30 = vld [vmem:[%s2797_s2 + $0x88] sm:$0xff] }
 0x399   :  { %v2244_v41 = vadd.f32 %v1708_v35, %v707_v29  ;;  %v1749_v35 = vld [vmem:[%s2797_s2 + $0x80] sm:$0xff] }
 0x39b   :  { %v744_v44 = vmul.f32 %v2244_v41, %v2244_v41  ;;  %724 = vmatpush.msrb.mxu2 %v2244_v41 }
 0x39d   :  { %725 = vmatpush.msrb.mxu2 %v2242_v40  ;;  %757 = vmatpush.msrb.mxu3 %v744_v44 }
 0x39f   :  { %726 = vmatpush.msrb.mxu2 %v2249_v43  ;;  %758 = vmatpush.msrb.mxu3 %v743_v48 }
 0x3a1   :  { %727 = vmatpush.msrb.mxu2 %v2254_v45  ;;  %759 = vmatpush.msrb.mxu3 %v742_v50 }
 0x3a2   :  { %1737 = vmatmul.msk.f32.vlgmr.msrb.gmra.mxu2 %vm105_vm0, %v2091_v54 }
 0x3a3   :  { %760 = vmatpush.msrb.mxu3 %v741_v52  ;;  %986 = vmatpush.msra.mxu2 %v1752_v27 }
 0x3a4   :  { %1741 = vmatmul.msk.f32.vlgmr.msrb.gmra.mxu3 %vm105_vm0, %v2091_v54 }
 0x3a5   :  { %987 = vmatpush.msra.mxu2 %v1751_v32 }
 0x3a7   :  { %988 = vmatpush.msra.mxu2 %v1750_v30  ;;  %v1710_v30 = vld [vmem:[%s2798_s3 + $0x88] sm:$0xff] }
 0x3a9   :  { %989 = vmatpush.msra.mxu2 %v1749_v35 }
 0x3aa   :  { %1738 = vmatmul.msk.f32.gmra.mxu2 %vm105_vm0, %v2100_v56 }
 0x3ac   :  { %1742 = vmatmul.msk.f32.gmra.mxu3 %vm105_vm0, %v2100_v56 }
 0x3b2   :  { %1739 = vmatmul.msk.f32.gmra.mxu2 %vm105_vm0, %v2106_v57 }
 0x3b4   :  { %1743 = vmatmul.msk.f32.gmra.mxu3 %vm105_vm0, %v2106_v57 }
 0x3ba   :  { %1740 = vmatmul.msk.f32.gmra.mxu2 %vm105_vm0, %v2112_v58 }
 0x3bc   :  { %1744 = vmatmul.msk.f32.gmra.mxu3 %vm105_vm0, %v2112_v58 }
 0x425   :  { %v729_v49 = vpop.f32.mrf.mxu2 }
 0x426   :  { %v774_v14 = vsel %vm105_vm0, %v729_v49, 0.0 }
 0x427   :  { %v762_v19 = vpop.f32.mrf.mxu3 }
 0x428   :  { %v786_v6 = vsel %vm105_vm0, %v762_v19, 0.0 }
 0x42d   :  { %v732_v53 = vpop.f32.mrf.mxu2 }
 0x42e   :  { %v777_v55 = vsel %vm105_vm0, %v732_v53, 0.0 }
 0x42f   :  { %v765_v59 = vpop.f32.mrf.mxu3  ;;  %778 = vadd.xlane.f32.xlu2 %v777_v55 }
 0x430   :  { %v789_v13 = vsel %vm105_vm0, %v765_v59, 0.0 }
 0x435   :  { %v735_v60 = vpop.f32.mrf.mxu2 }
 0x436   :  { %v780_v61 = vsel %vm105_vm0, %v735_v60, 0.0 }
 0x437   :  { %v768_v62 = vpop.f32.mrf.mxu3  ;;  %781 = vadd.xlane.f32.xlu0 %v780_v61 }
 0x438   :  { %v792_v0 = vsel %vm105_vm0, %v768_v62, 0.0 }
 0x43d   :  { %v738_v63 = vpop.f32.mrf.mxu2 }
 0x43e   :  { %v783_v1 = vsel %vm105_vm0, %v738_v63, 0.0 }
 0x43f   :  { %v771_v2 = vpop.f32.mrf.mxu3  ;;  %793 = vadd.xlane.f32.xlu0 %v792_v0  ;;  %784 = vadd.xlane.f32.xlu2 %v783_v1 }
 0x440   :  { %v795_v3 = vsel %vm105_vm0, %v771_v2, 0.0 }
 0x441   :  { %796 = vadd.xlane.f32.xlu1 %v795_v3 }
 0x447   :  { %787 = vadd.xlane.f32.xlu0 %v786_v6  ;;  %790 = vadd.xlane.f32.xlu2 %v789_v13  ;;  %v1711_v6 = vld [vmem:[%s2798_s3 + $0x90] sm:$0xff] }
 0x449   :  { %775 = vadd.xlane.f32.xlu1 %v774_v14 }
 0x4a2   :  { %v2289_v15 = vpop.xlane.xlu2 %778 }
 0x4a3   :  { %v799_v28 = vmul.f32 %v2289_v15, %v2289_v15 }
 0x4aa   :  { %v782_v16 = vpop.xlane.xlu0 %781 }
 0x4ab   :  { %v800_v17 = vmul.f32 %v782_v16, %v782_v16  ;;  %v812_v0 = vsub.f32 %v2242_v40, %v782_v16  ;;  %v1712_v40 = vld [vmem:[%s2798_s3 + $0x98] sm:$0xff] }
 0x4b2   :  { %v794_v18 = vpop.xlane.xlu0 %793  ;;  %v2291_v20 = vpop.xlane.xlu2 %784 }
 0x4b3   :  { %v804_v22 = vsub.f32 %v794_v18, %v800_v17  ;;  %v801_v23 = vmul.f32 %v2291_v20, %v2291_v20  ;;  %v813_v14 = vsub.f32 %v2244_v41, %v2291_v20  ;;  %v1715_v41 = vld [vmem:[%s2798_s3 + $0xb0] sm:$0xff] }
 0x4b4   :  { %v797_v24 = vpop.xlane.xlu1 %796 }
 0x4b5   :  { %v808_v25 = vmax.f32 %v804_v22, 0.0  ;;  %v805_v46 = vsub.f32 %v797_v24, %v801_v23 }
 0x4b7   :  { %v816_v21 = vadd.f32 1e-05, %v808_v25  ;;  %v809_v26 = vmax.f32 %v805_v46, 0.0 }
 0x4b9   :  { %1835 = vrsqrt.f32 %v816_v21  ;;  %v817_v31 = vadd.f32 1e-05, %v809_v26  ;;  %vm844_vm15 = vweird.f32 %v816_v21 }
 0x4ba   :  { %v791_v33 = vpop.xlane.xlu2 %790  ;;  %v788_v51 = vpop.xlane.xlu0 %787 }
 0x4bb   :  { %1837 = vrsqrt.f32 %v817_v31  ;;  %v803_v47 = vsub.f32 %v791_v33, %v799_v28  ;;  %vm854_vm3 = vweird.f32 %v817_v31  ;;  %v811_v28 = vsub.f32 %v2249_v43, %v2289_v15 }
 0x4bc   :  { %v2306_v34 = vpop.xlane.xlu1 %775 }
 0x4bd   :  { %v807_v36 = vmax.f32 %v803_v47, 0.0  ;;  %v798_v37 = vmul.f32 %v2306_v34, %v2306_v34  ;;  %v810_v43 = vsub.f32 %v2254_v45, %v2306_v34  ;;  %v1748_v34 = vld [vmem:[%s2797_s2 + $0x78] sm:$0xff] }
 0x4be   :  { %1027 = vmatpush.msra.mxu3 %v1748_v34 }
 0x4bf   :  { %v1836_v29 = vpop.eup %1835  ;;  %v815_v38 = vadd.f32 1e-05, %v807_v36  ;;  %v802_v39 = vsub.f32 %v788_v51, %v798_v37  ;;  %v1714_v51 = vld [vmem:[%s2798_s3 + $0xa8] sm:$0xff] }
 0x4c0   :  { %v839_v42 = vmul.f32 %v1836_v29, %v816_v21  ;;  %vm845_vm14 = vweird.f32 %v1836_v29  ;;  %v1716_v21 = vld [vmem:[%s2798_s3 + $0xb8] sm:$0xff] }
 0x4c1   :  { %v1838_v44 = vpop.eup %1837  ;;  %1839 = vrsqrt.f32 %v815_v38  ;;  %v806_v48 = vmax.f32 %v802_v39, 0.0  ;;  %vm846_vm2 = vmor %vm844_vm15, %vm845_vm14  ;;  %vm834_vm6 = vweird.f32 %v815_v38 }
 0x4c2   :  { %v840_v50 = vmul.f32 %v1836_v29, %v839_v42  ;;  %v849_v52 = vmul.f32 %v1838_v44, %v817_v31  ;;  %vm855_vm1 = vweird.f32 %v1838_v44 }
 0x4c3   :  { %v814_v49 = vadd.f32 1e-05, %v806_v48  ;;  %vm856_vm4 = vmor %vm854_vm3, %vm855_vm1  ;;  %v1713_v48 = vld [vmem:[%s2798_s3 + $0xa0] sm:$0xff] }
 0x4c4   :  { %v841_v19 = vmul.f32 0.5, %v840_v50  ;;  %v850_v53 = vmul.f32 %v1838_v44, %v849_v52  ;;  %v1747_v52 = vld [vmem:[%s2797_s2 + $0x70] sm:$0xff] }
 0x4c5   :  { %1841 = vrsqrt.f32 %v814_v49  ;;  %vm824_vm9 = vweird.f32 %v814_v49  ;;  %1028 = vmatpush.msra.mxu3 %v1747_v52 }
 0x4c6   :  { %v842_v55 = vsub.f32 1.5, %v841_v19  ;;  %v851_v59 = vmul.f32 0.5, %v850_v53  ;;  %v1746_v19 = vld [vmem:[%s2797_s2 + $0x68] sm:$0xff] }
 0x4c7   :  { %v1840_v60 = vpop.eup %1839  ;;  %1029 = vmatpush.msra.mxu3 %v1746_v19  ;;  %v1268_v19 = vld [vmem:[%s2800_s5 + $0x68] sm:$0xff] }
 0x4c8   :  { %v843_v61 = vmul.f32 %v1836_v29, %v842_v55  ;;  %v852_v62 = vsub.f32 1.5, %v851_v59  ;;  %v829_v63 = vmul.f32 %v1840_v60, %v815_v38  ;;  %vm835_vm5 = vweird.f32 %v1840_v60  ;;  %v1709_v38 = vld [vmem:[%s2798_s3 + $0x80] sm:$0xff] }
 0x4c9   :  { %vm836_vm7 = vmor %vm834_vm6, %vm835_vm5 }
 0x4ca   :  { %v847_v1 = vsel %vm846_vm2, %v1836_v29, %v843_v61  ;;  %v853_v2 = vmul.f32 %v1838_v44, %v852_v62  ;;  %v830_v3 = vmul.f32 %v1840_v60, %v829_v63 }
 0x4cb   :  { %v1842_v13 = vpop.eup %1841  ;;  %v860_v17 = vmul.f32 %v847_v1, %v812_v0 }
 0x4cc   :  { %v857_v18 = vsel %vm856_vm4, %v1838_v44, %v853_v2  ;;  %v831_v22 = vmul.f32 0.5, %v830_v3  ;;  %v819_v23 = vmul.f32 %v1842_v13, %v814_v49  ;;  %vm825_vm8 = vweird.f32 %v1842_v13 }
 0x4cd   :  { %v861_v16 = vmul.f32 %v857_v18, %v813_v14  ;;  %v864_v24 = vmul.f32 %v1711_v6, %v860_v17  ;;  %vm826_vm10 = vmor %vm824_vm9, %vm825_vm8  ;;  %vm1639_vm8 = vcmask 254976  }
 0x4ce   :  { %v832_v25 = vsub.f32 1.5, %v831_v22  ;;  %v820_v46 = vmul.f32 %v1842_v13, %v819_v23 }
 0x4cf   :  { %v865_v20 = vmul.f32 %v1712_v40, %v861_v16  ;;  %v868_v32 = vadd.f32 %v1715_v41, %v864_v24  ;;  %v1760_v41 = vld [vmem:[%s2798_s3 + $0xd8] sm:$0xff] }
 0x4d0   :  { %v833_v26 = vmul.f32 %v1840_v60, %v832_v25  ;;  %v821_v27 = vmul.f32 0.5, %v820_v46 }
 0x4d1   :  { %v869_v31 = vadd.f32 %v1716_v21, %v865_v20  ;;  %v872_v15 = vmax.f32 %v868_v32, 0.0  ;;  %v1759_v21 = vld [vmem:[%s2798_s3 + $0xd0] sm:$0xff] }
 0x4d2   :  { %v837_v33 = vsel %vm836_vm7, %v1840_v60, %v833_v26  ;;  %v822_v47 = vsub.f32 1.5, %v821_v27  ;;  %v1758_v27 = vld [vmem:[%s2798_s3 + $0xc8] sm:$0xff] }
 0x4d3   :  { %v873_v35 = vmax.f32 %v869_v31, 0.0  ;;  %v859_v36 = vmul.f32 %v837_v33, %v811_v28  ;;  %v1757_v33 = vld [vmem:[%s2798_s3 + $0xc0] sm:$0xff] }
 0x4d4   :  { %v823_v37 = vmul.f32 %v1842_v13, %v822_v47 }
 0x4d5   :  { %916 = vmatpush.msra.mxu0 %v873_v35  ;;  %945 = vmatpush.msra.mxu1 %v873_v35  ;;  %v863_v29 = vmul.f32 %v1710_v30, %v859_v36 }
 0x4d6   :  { %v827_v39 = vsel %vm826_vm10, %v1842_v13, %v823_v37 }
 0x4d7   :  { %v858_v42 = vmul.f32 %v827_v39, %v810_v43  ;;  %917 = vmatpush.msra.mxu0 %v872_v15  ;;  %946 = vmatpush.msra.mxu1 %v872_v15  ;;  %v867_v44 = vadd.f32 %v1714_v51, %v863_v29 }
 0x4d9   :  { %v862_v50 = vmul.f32 %v1709_v38, %v858_v42  ;;  %v871_v45 = vmax.f32 %v867_v44, 0.0 }
 0x4db   :  { %918 = vmatpush.msra.mxu0 %v871_v45  ;;  %947 = vmatpush.msra.mxu1 %v871_v45  ;;  %v866_v49 = vadd.f32 %v1713_v48, %v862_v50 }
 0x4dd   :  { %v870_v53 = vmax.f32 %v866_v49, 0.0  ;;  %v1267_v49 = vld [vmem:[%s2800_s5 + $0x60] sm:$0xff] }
 0x4df   :  { %919 = vmatpush.msra.mxu0 %v870_v53  ;;  %948 = vmatpush.msra.mxu1 %v870_v53 }
 0x4e0   :  { %1777 = vmatmul.msk.f32.vlgmr.msra.gmra.mxu2 %vm105_vm0, %v870_v53  ;;  %1769 = vmatmul.msk.f32.vlgmr.msra.gmra.mxu0 %vm105_vm0, %v2009_v4  ;;  %v1745_v4 = vld [vmem:[%s2797_s2 + $0x60] sm:$0xff]  ;;  %v1269_v53 = vld [vmem:[%s2800_s5 + $0x70] sm:$0xff] }
 0x4e1   :  { %1773 = vmatmul.msk.f32.vlgmr.msra.gmra.mxu1 %vm105_vm0, %v2023_v8  ;;  %1030 = vmatpush.msra.mxu3 %v1745_v4  ;;  %v1755_v8 = vld [vmem:[%s2797_s2 + $0xb0] sm:$0xff]  ;;  %v1270_v4 = vld [vmem:[%s2800_s5 + $0x78] sm:$0xff] }
 0x4e3   :  { %1295 = vmatpush.msrb.mxu3 %v1267_v49  ;;  %v1476_v49 = vld [vmem:[%s2802_s7 + $0x168] sm:$0xff] }
 0x4e8   :  { %1778 = vmatmul.msk.f32.gmra.mxu2 %vm105_vm0, %v871_v45  ;;  %1770 = vmatmul.msk.f32.gmra.mxu0 %vm105_vm0, %v2021_v7  ;;  %v1756_v7 = vld [vmem:[%s2797_s2 + $0xb8] sm:$0xff] }
 0x4e9   :  { %1774 = vmatmul.msk.f32.gmra.mxu1 %vm105_vm0, %v2032_v10  ;;  %1068 = vmatpush.msrb.mxu0 %v1756_v7 }
 0x4eb   :  { %1069 = vmatpush.msrb.mxu0 %v1755_v8  ;;  %v1263_v8 = vld [vmem:[%s2800_s5 + $0x40] sm:$0xff] }
 0x4ec   :  { %1296 = vmatpush.msrb.mxu3 %v1263_v8  ;;  %v1494_v8 = vld [vmem:[%s2802_s7 + $0x1f8] sm:$0xff] }
 0x4f0   :  { %1779 = vmatmul.msk.f32.gmra.mxu2 %vm105_vm0, %v872_v15  ;;  %1771 = vmatmul.msk.f32.gmra.mxu0 %vm105_vm0, %v2030_v9  ;;  %v1753_v9 = vld [vmem:[%s2797_s2 + $0xa0] sm:$0xff] }
 0x4f1   :  { %1775 = vmatmul.msk.f32.gmra.mxu1 %vm105_vm0, %v2038_v11 }
 0x4f8   :  { %1780 = vmatmul.msk.f32.gmra.mxu2 %vm105_vm0, %v873_v35  ;;  %1772 = vmatmul.msk.f32.gmra.mxu0 %vm105_vm0, %v2011_v5  ;;  %v1754_v5 = vld [vmem:[%s2797_s2 + $0xa8] sm:$0xff] }
 0x4f9   :  { %1776 = vmatmul.msk.f32.gmra.mxu1 %vm105_vm0, %v2043_v12  ;;  %1070 = vmatpush.msrb.mxu0 %v1754_v5  ;;  %v1264_v5 = vld [vmem:[%s2800_s5 + $0x48] sm:$0xff] }
 0x4fb   :  { %1071 = vmatpush.msrb.mxu0 %v1753_v9  ;;  %v1265_v9 = vld [vmem:[%s2800_s5 + $0x50] sm:$0xff] }
 0x4fd   :  { %1324 = vmatpush.msra.mxu0 %v1268_v19  ;;  %v1446_v19 = vld [vmem:[%s2802_s7 + $0x78] sm:$0xff] }
 0x4ff   :  { %1325 = vmatpush.msra.mxu0 %v1264_v5  ;;  %v1445_v5 = vld [vmem:[%s2802_s7 + $0x70] sm:$0xff] }
 0x55d   :  { %v921_v10 = vpop.f32.mrf.mxu0 }
 0x55e   :  { %1781 = vmatmul.msk.f32.vlgmr.msra.gmra.mxu3 %vm105_vm0, %v921_v10  ;;  %v950_v11 = vpop.f32.mrf.mxu1 }
 0x55f   :  { %1785 = vmatmul.msk.f32.vlgmr.msrb.gmra.mxu0 %vm105_vm0, %v950_v11  ;;  %v1266_v11 = vld [vmem:[%s2800_s5 + $0x58] sm:$0xff] }
 0x563   :  { %v991_v63 = vpop.f32.mrf.mxu2 }
 0x565   :  { %v924_v12 = vpop.f32.mrf.mxu0 }
 0x566   :  { %1782 = vmatmul.msk.f32.gmra.mxu3 %vm105_vm0, %v924_v12  ;;  %v953_v55 = vpop.f32.mrf.mxu1  ;;  %v1259_v12 = vld [vmem:[%s2800_s5 + $0x20] sm:$0xff] }
 0x567   :  { %1786 = vmatmul.msk.f32.gmra.mxu0 %vm105_vm0, %v953_v55  ;;  %v1260_v55 = vld [vmem:[%s2800_s5 + $0x28] sm:$0xff]  ;;  %1297 = vmatpush.msrb.mxu3 %v1259_v12 }
 0x568   :  { %1326 = vmatpush.msra.mxu0 %v1260_v55 }
 0x56b   :  { %v994_v2 = vpop.f32.mrf.mxu2 }
 0x56d   :  { %v927_v59 = vpop.f32.mrf.mxu0 }
 0x56e   :  { %1783 = vmatmul.msk.f32.gmra.mxu3 %vm105_vm0, %v927_v59  ;;  %v956_v60 = vpop.f32.mrf.mxu1  ;;  %v1261_v59 = vld [vmem:[%s2800_s5 + $0x30] sm:$0xff] }
 0x56f   :  { %1787 = vmatmul.msk.f32.gmra.mxu0 %vm105_vm0, %v956_v60  ;;  %v1262_v60 = vld [vmem:[%s2800_s5 + $0x38] sm:$0xff] }
 0x573   :  { %v997_v13 = vpop.f32.mrf.mxu2 }
 0x575   :  { %v930_v61 = vpop.f32.mrf.mxu0 }
 0x576   :  { %1784 = vmatmul.msk.f32.gmra.mxu3 %vm105_vm0, %v930_v61  ;;  %v959_v62 = vpop.f32.mrf.mxu1 }
 0x577   :  { %1788 = vmatmul.msk.f32.gmra.mxu0 %vm105_vm0, %v959_v62  ;;  %v1255_v62 = vld [vmem:[%s2800_s5] sm:$0xff] }
 0x578   :  { %1298 = vmatpush.msrb.mxu3 %v1255_v62  ;;  %v1459_v62 = vld [vmem:[%s2802_s7 + $0xe0] sm:$0xff] }
 0x57a   :  { %1495 = vmatpush.msra.mxu3 %v1446_v19  ;;  %v1764_v19 = vld [vmem:[%s2798_s3 + $0xf8] sm:$0xff] }
 0x57b   :  { %v1000_v22 = vpop.f32.mrf.mxu2 }
 0x57c   :  { %1496 = vmatpush.msra.mxu3 %v1445_v5  ;;  %v1452_v5 = vld [vmem:[%s2802_s7 + $0xa8] sm:$0xff] }
 0x5dc   :  { %v1073_v0 = vpop.f32.mrf.mxu0 }
 0x5e1   :  { %v1032_v1 = vpop.f32.mrf.mxu3 }
 0x5e2   :  { %v1033_v24 = vadd.f32 %v1032_v1, %v991_v63  ;;  %v1256_v63 = vld [vmem:[%s2800_s5 + $0x8] sm:$0xff] }
 0x5e3   :  { %1327 = vmatpush.msra.mxu0 %v1256_v63 }
 0x5e4   :  { %v1076_v3 = vpop.f32.mrf.mxu0  ;;  %v1085_v28 = vadd.f32 %v1073_v0, %v1033_v24  ;;  %v1257_v0 = vld [vmem:[%s2800_s5 + $0x10] sm:$0xff] }
 0x5e6   :  { %v2417_v35 = vadd.f32 %v1757_v33, %v1085_v28 }
 0x5e8   :  { %v1122_v51 = vmul.f32 %v2417_v35, %v2417_v35 }
 0x5e9   :  { %v1035_v6 = vpop.f32.mrf.mxu3 }
 0x5ea   :  { %v1036_v23 = vadd.f32 %v1035_v6, %v994_v2  ;;  %v1258_v2 = vld [vmem:[%s2800_s5 + $0x18] sm:$0xff] }
 0x5ec   :  { %v1079_v14 = vpop.f32.mrf.mxu0  ;;  %v1086_v20 = vadd.f32 %v1076_v3, %v1036_v23 }
 0x5ee   :  { %v2412_v47 = vadd.f32 %v1758_v27, %v1086_v20 }
 0x5f0   :  { %v1123_v37 = vmul.f32 %v2412_v47, %v2412_v47 }
 0x5f1   :  { %v1038_v17 = vpop.f32.mrf.mxu3 }
 0x5f2   :  { %v1039_v18 = vadd.f32 %v1038_v17, %v997_v13 }
 0x5f4   :  { %v1082_v16 = vpop.f32.mrf.mxu0  ;;  %v1087_v25 = vadd.f32 %v1079_v14, %v1039_v18 }
 0x5f6   :  { %v2405_v31 = vadd.f32 %v1759_v21, %v1087_v25 }
 0x5f8   :  { %v1124_v36 = vmul.f32 %v2405_v31, %v2405_v31 }
 0x5f9   :  { %v1041_v40 = vpop.f32.mrf.mxu3 }
 0x5fa   :  { %v1042_v46 = vadd.f32 %v1041_v40, %v1000_v22 }
 0x5fc   :  { %v1088_v26 = vadd.f32 %v1082_v16, %v1042_v46 }
 0x5fe   :  { %v2407_v32 = vadd.f32 %v1760_v41, %v1088_v26 }
 0x600   :  { %v1125_v30 = vmul.f32 %v2407_v32, %v2407_v32  ;;  %1105 = vmatpush.msrb.mxu1 %v2407_v32 }
 0x602   :  { %1106 = vmatpush.msrb.mxu1 %v2405_v31  ;;  %1138 = vmatpush.msrb.mxu2 %v1125_v30 }
 0x604   :  { %1107 = vmatpush.msrb.mxu1 %v2412_v47  ;;  %1139 = vmatpush.msrb.mxu2 %v1124_v36 }
 0x606   :  { %1108 = vmatpush.msrb.mxu1 %v2417_v35  ;;  %1140 = vmatpush.msrb.mxu2 %v1123_v37 }
 0x607   :  { %1789 = vmatmul.msk.f32.vlgmr.msrb.gmra.mxu1 %vm105_vm0, %v2091_v54 }
 0x608   :  { %1141 = vmatpush.msrb.mxu2 %v1122_v51  ;;  %1353 = vmatpush.msra.mxu1 %v1269_v53 }
 0x609   :  { %1793 = vmatmul.msk.f32.vlgmr.msrb.gmra.mxu2 %vm105_vm0, %v2091_v54 }
 0x60a   :  { %1382 = vmatpush.msra.mxu2 %v1270_v4  ;;  %1354 = vmatpush.msra.mxu1 %v1265_v9 }
 0x60c   :  { %1383 = vmatpush.msra.mxu2 %v1266_v11  ;;  %1355 = vmatpush.msra.mxu1 %v1261_v59  ;;  %v1493_v11 = vld [vmem:[%s2802_s7 + $0x1f0] sm:$0xff] }
 0x60e   :  { %1384 = vmatpush.msra.mxu2 %v1262_v60  ;;  %1356 = vmatpush.msra.mxu1 %v1257_v0  ;;  %v1444_v0 = vld [vmem:[%s2802_s7 + $0x68] sm:$0xff] }
 0x60f   :  { %1790 = vmatmul.msk.f32.gmra.mxu1 %vm105_vm0, %v2100_v56  ;;  %1497 = vmatpush.msra.mxu3 %v1444_v0  ;;  %v1466_v0 = vld [vmem:[%s2802_s7 + $0x118] sm:$0xff] }
 0x610   :  { %1385 = vmatpush.msra.mxu2 %v1258_v2 }
 0x611   :  { %1794 = vmatmul.msk.f32.gmra.mxu2 %vm105_vm0, %v2100_v56 }
 0x612   :  { %1582 = vmatpush.msrb.mxu2 %v1494_v8  ;;  %v1768_v8 = vld [vmem:[%s2798_s3 + $0x118] sm:$0xff] }
 0x614   :  { %1583 = vmatpush.msrb.mxu2 %v1493_v11  ;;  %v1437_v11 = vld [vmem:[%s2802_s7 + $0x30] sm:$0xff] }
 0x617   :  { %1791 = vmatmul.msk.f32.gmra.mxu1 %vm105_vm0, %v2106_v57 }
 0x619   :  { %1795 = vmatmul.msk.f32.gmra.mxu2 %vm105_vm0, %v2106_v57 }
 0x61f   :  { %1792 = vmatmul.msk.f32.gmra.mxu1 %vm105_vm0, %v2112_v58 }
 0x621   :  { %1796 = vmatmul.msk.f32.gmra.mxu2 %vm105_vm0, %v2112_v58 }
 0x684   :  { %v1110_v43 = vpop.f32.mrf.mxu1 }
 0x685   :  { %v1155_v54 = vsel %vm105_vm0, %v1110_v43, 0.0 }
 0x686   :  { %1156 = vadd.xlane.f32.xlu1 %v1155_v54  ;;  %v1761_v54 = vld [vmem:[%s2798_s3 + $0xe0] sm:$0xff] }
 0x68c   :  { %v1113_v15 = vpop.f32.mrf.mxu1  ;;  %v1143_v29 = vpop.f32.mrf.mxu2 }
 0x68d   :  { %v1167_v56 = vsel %vm105_vm0, %v1143_v29, 0.0  ;;  %v1158_v38 = vsel %vm105_vm0, %v1113_v15, 0.0 }
 0x68e   :  { %1168 = vadd.xlane.f32.xlu2 %v1167_v56  ;;  %1159 = vadd.xlane.f32.xlu0 %v1158_v38 }
 0x694   :  { %v1116_v39 = vpop.f32.mrf.mxu1  ;;  %v1146_v57 = vpop.f32.mrf.mxu2 }
 0x695   :  { %v1170_v42 = vsel %vm105_vm0, %v1146_v57, 0.0  ;;  %v1161_v44 = vsel %vm105_vm0, %v1116_v39, 0.0  ;;  %v1765_v57 = vld [vmem:[%s2798_s3 + $0x100] sm:$0xff] }
 0x696   :  { %1171 = vadd.xlane.f32.xlu1 %v1170_v42  ;;  %1162 = vadd.xlane.f32.xlu2 %v1161_v44  ;;  %v1478_v44 = vld [vmem:[%s2802_s7 + $0x178] sm:$0xff] }
 0x697   :  { %1553 = vmatpush.msrb.mxu1 %v1478_v44  ;;  %v1470_v44 = vld [vmem:[%s2802_s7 + $0x138] sm:$0xff] }
 0x69c   :  { %v1119_v58 = vpop.f32.mrf.mxu1  ;;  %v1149_v48 = vpop.f32.mrf.mxu2 }
 0x69d   :  { %v1173_v50 = vsel %vm105_vm0, %v1149_v48, 0.0  ;;  %v1164_v45 = vsel %vm105_vm0, %v1119_v58, 0.0  ;;  %v1461_v58 = vld [vmem:[%s2802_s7 + $0xf0] sm:$0xff] }
 0x69e   :  { %1174 = vadd.xlane.f32.xlu0 %v1173_v50  ;;  %1165 = vadd.xlane.f32.xlu1 %v1164_v45  ;;  %v1477_v45 = vld [vmem:[%s2802_s7 + $0x170] sm:$0xff] }
 0x69f   :  { %1554 = vmatpush.msrb.mxu1 %v1477_v45 }
 0x6a1   :  { %1555 = vmatpush.msrb.mxu1 %v1476_v49 }
 0x6a4   :  { %v1152_v34 = vpop.f32.mrf.mxu2 }
 0x6a5   :  { %v1176_v52 = vsel %vm105_vm0, %v1152_v34, 0.0 }
 0x6a6   :  { %1177 = vadd.xlane.f32.xlu2 %v1176_v52  ;;  %v1460_v52 = vld [vmem:[%s2802_s7 + $0xe8] sm:$0xff] }
 0x6f9   :  { %v2464_v7 = vpop.xlane.xlu1 %1156 }
 0x6fa   :  { %v1179_v10 = vmul.f32 %v2464_v7, %v2464_v7  ;;  %v1191_v43 = vsub.f32 %v2417_v35, %v2464_v7  ;;  %v1462_v35 = vld [vmem:[%s2802_s7 + $0xf8] sm:$0xff] }
 0x6fb   :  { %1524 = vmatpush.msrb.mxu0 %v1462_v35  ;;  %v1454_v35 = vld [vmem:[%s2802_s7 + $0xb8] sm:$0xff] }
 0x6fd   :  { %1525 = vmatpush.msrb.mxu0 %v1461_v58 }
 0x6ff   :  { %1526 = vmatpush.msrb.mxu0 %v1460_v52 }
 0x701   :  { %v1169_v61 = vpop.xlane.xlu2 %1168  ;;  %v2504_v6 = vpop.xlane.xlu0 %1159  ;;  %1527 = vmatpush.msrb.mxu0 %v1459_v62  ;;  %v1484_v62 = vld [vmem:[%s2802_s7 + $0x1a8] sm:$0xff] }
 0x702   :  { %v1183_v1 = vsub.f32 %v1169_v61, %v1179_v10  ;;  %v1180_v14 = vmul.f32 %v2504_v6, %v2504_v6  ;;  %v1192_v12 = vsub.f32 %v2412_v47, %v2504_v6  ;;  %v1762_v61 = vld [vmem:[%s2798_s3 + $0xe8] sm:$0xff]  ;;  %v1475_v47 = vld [vmem:[%s2802_s7 + $0x160] sm:$0xff]  ;;  %v1458_v6 = vld [vmem:[%s2802_s7 + $0xd8] sm:$0xff] }
 0x703   :  { %1556 = vmatpush.msrb.mxu1 %v1475_v47  ;;  %1528 = vmatpush.msrb.mxu0 %v1458_v6  ;;  %v1448_v6 = vld [vmem:[%s2802_s7 + $0x88] sm:$0xff] }
 0x704   :  { %v1187_v3 = vmax.f32 %v1183_v1, 0.0  ;;  %v1492_v1 = vld [vmem:[%s2802_s7 + $0x1e8] sm:$0xff] }
 0x705   :  { %1584 = vmatpush.msrb.mxu2 %v1492_v1  ;;  %v1449_v1 = vld [vmem:[%s2802_s7 + $0x90] sm:$0xff] }
 0x706   :  { %v1195_v13 = vadd.f32 1e-05, %v1187_v3  ;;  %v1766_v3 = vld [vmem:[%s2798_s3 + $0x108] sm:$0xff] }
 0x708   :  { %1843 = vrsqrt.f32 %v1195_v13  ;;  %vm1205_vm12 = vweird.f32 %v1195_v13 }
 0x709   :  { %v1172_v17 = vpop.xlane.xlu1 %1171  ;;  %v2508_v23 = vpop.xlane.xlu2 %1162 }
 0x70a   :  { %v1184_v18 = vsub.f32 %v1172_v17, %v1180_v14  ;;  %v1181_v24 = vmul.f32 %v2508_v23, %v2508_v23  ;;  %v1443_v17 = vld [vmem:[%s2802_s7 + $0x60] sm:$0xff] }
 0x70b   :  { %1498 = vmatpush.msra.mxu3 %v1443_v17  ;;  %v1434_v17 = vld [vmem:[%s2802_s7 + $0x18] sm:$0xff] }
 0x70c   :  { %v1188_v22 = vmax.f32 %v1184_v18, 0.0  ;;  %v1491_v18 = vld [vmem:[%s2802_s7 + $0x1e0] sm:$0xff] }
 0x70d   :  { %1585 = vmatpush.msrb.mxu2 %v1491_v18  ;;  %v1447_v18 = vld [vmem:[%s2802_s7 + $0x80] sm:$0xff] }
 0x70e   :  { %v1844_v40 = vpop.eup %1843  ;;  %v1196_v16 = vadd.f32 1e-05, %v1188_v22 }
 0x70f   :  { %v1200_v25 = vmul.f32 %v1844_v40, %v1195_v13  ;;  %vm1206_vm11 = vweird.f32 %v1844_v40  ;;  %v1474_v13 = vld [vmem:[%s2802_s7 + $0x158] sm:$0xff] }
 0x710   :  { %1845 = vrsqrt.f32 %v1196_v16  ;;  %vm1207_vm13 = vmor %vm1205_vm12, %vm1206_vm11  ;;  %vm1215_vm15 = vweird.f32 %v1196_v16  ;;  %1557 = vmatpush.msrb.mxu1 %v1474_v13  ;;  %v1464_v13 = vld [vmem:[%s2802_s7 + $0x108] sm:$0xff] }
 0x711   :  { %v1201_v46 = vmul.f32 %v1844_v40, %v1200_v25  ;;  %v1175_v21 = vpop.xlane.xlu0 %1174  ;;  %v2512_v28 = vpop.xlane.xlu1 %1165 }
 0x712   :  { %v1185_v41 = vsub.f32 %v1175_v21, %v1181_v24  ;;  %v1182_v36 = vmul.f32 %v2512_v28, %v2512_v28  ;;  %v1490_v21 = vld [vmem:[%s2802_s7 + $0x1d8] sm:$0xff] }
 0x713   :  { %v1202_v20 = vmul.f32 0.5, %v1201_v46  ;;  %v1442_v46 = vld [vmem:[%s2802_s7 + $0x58] sm:$0xff]  ;;  %1586 = vmatpush.msrb.mxu2 %v1490_v21  ;;  %v1431_v21 = vld [vmem:[%s2802_s7] sm:$0xff] }
 0x714   :  { %v1189_v26 = vmax.f32 %v1185_v41, 0.0  ;;  %1499 = vmatpush.msra.mxu3 %v1442_v46  ;;  %v1480_v46 = vld [vmem:[%s2802_s7 + $0x188] sm:$0xff] }
 0x715   :  { %v1203_v27 = vsub.f32 1.5, %v1202_v20 }
 0x716   :  { %v1846_v33 = vpop.eup %1845  ;;  %v2514_v30 = vadd.f32 1e-05, %v1189_v26  ;;  %v1193_v26 = vsub.f32 %v2405_v31, %v2508_v23  ;;  %v1472_v31 = vld [vmem:[%s2802_s7 + $0x148] sm:$0xff] }
 0x717   :  { %v1204_v37 = vmul.f32 %v1844_v40, %v1203_v27  ;;  %v1210_v51 = vmul.f32 %v1846_v33, %v1196_v16  ;;  %vm1216_vm14 = vweird.f32 %v1846_v33  ;;  %v1473_v16 = vld [vmem:[%s2802_s7 + $0x150] sm:$0xff] }
 0x718   :  { %1847 = vrsqrt.f32 %v2514_v30  ;;  %vm1217_vm1 = vmor %vm1215_vm15, %vm1216_vm14  ;;  %vm1225_vm3 = vweird.f32 %v2514_v30  ;;  %1558 = vmatpush.msrb.mxu1 %v1473_v16  ;;  %v1433_v16 = vld [vmem:[%s2802_s7 + $0x10] sm:$0xff] }
 0x719   :  { %v1208_v15 = vsel %vm1207_vm13, %v1844_v40, %v1204_v37  ;;  %v1211_v29 = vmul.f32 %v1846_v33, %v1210_v51  ;;  %v1178_v56 = vpop.xlane.xlu2 %1177  ;;  %v1457_v40 = vld [vmem:[%s2802_s7 + $0xd0] sm:$0xff]  ;;  %v1456_v37 = vld [vmem:[%s2802_s7 + $0xc8] sm:$0xff] }
 0x71a   :  { %v1239_v38 = vmul.f32 %v1208_v15, %v1191_v43  ;;  %v1186_v39 = vsub.f32 %v1178_v56, %v1182_v36  ;;  %1529 = vmatpush.msrb.mxu0 %v1457_v40  ;;  %v1441_v51 = vld [vmem:[%s2802_s7 + $0x50] sm:$0xff]  ;;  %v1471_v56 = vld [vmem:[%s2802_s7 + $0x140] sm:$0xff]  ;;  %1559 = vmatpush.msrb.mxu1 %v1472_v31  ;;  %v1482_v40 = vld [vmem:[%s2802_s7 + $0x198] sm:$0xff] }
 0x71b   :  { %v1212_v42 = vmul.f32 0.5, %v1211_v29  ;;  %v1489_v43 = vld [vmem:[%s2802_s7 + $0x1d0] sm:$0xff]  ;;  %v1455_v29 = vld [vmem:[%s2802_s7 + $0xc0] sm:$0xff]  ;;  %1500 = vmatpush.msra.mxu3 %v1441_v51  ;;  %v1402_v31 = vld [vmem:[#allocation5 + $0x18] sm:$0xff] }
 0x71c   :  { %v1243_v48 = vmul.f32 %v1761_v54, %v1239_v38  ;;  %v1190_v50 = vmax.f32 %v1186_v39, 0.0  ;;  %v1767_v15 = vld [vmem:[%s2798_s3 + $0x110] sm:$0xff]  ;;  %1530 = vmatpush.msrb.mxu0 %v1456_v37  ;;  %v1440_v39 = vld [vmem:[%s2802_s7 + $0x48] sm:$0xff]  ;;  %1587 = vmatpush.msrb.mxu2 %v1489_v43  ;;  %v1399_v37 = vld [vmem:[#allocation5] sm:$0xff] }
 0x71d   :  { %v1213_v34 = vsub.f32 1.5, %v1212_v42  ;;  %1560 = vmatpush.msrb.mxu1 %v1471_v56  ;;  %1501 = vmatpush.msra.mxu3 %v1440_v39  ;;  %v1404_v51 = vld [vmem:[#allocation5 + $0x28] sm:$0xff] }
 0x71e   :  { %v2548_v53 = vpop.eup %1847  ;;  %v2550_v4 = vadd.f32 1e-05, %v1190_v50  ;;  %v1247_v7 = vadd.f32 %v1765_v57, %v1243_v48  ;;  %v1488_v57 = vld [vmem:[%s2802_s7 + $0x1c8] sm:$0xff]  ;;  %1531 = vmatpush.msrb.mxu0 %v1455_v29  ;;  %v1439_v48 = vld [vmem:[%s2802_s7 + $0x40] sm:$0xff] }
 0x71f   :  { %v1214_v9 = vmul.f32 %v1846_v33, %v1213_v34  ;;  %v1220_v10 = vmul.f32 %v2548_v53, %v2514_v30  ;;  %vm1226_vm2 = vweird.f32 %v2548_v53  ;;  %v1763_v30 = vld [vmem:[%s2798_s3 + $0xf0] sm:$0xff]  ;;  %v1487_v50 = vld [vmem:[%s2802_s7 + $0x1c0] sm:$0xff]  ;;  %1588 = vmatpush.msrb.mxu2 %v1488_v57  ;;  %v1194_v34 = vsub.f32 %v2407_v32, %v2512_v28  ;;  %1561 = vmatpush.msrb.mxu1 %v1470_v44 }
 0x720   :  { %1849 = vrsqrt.f32 %v2550_v4  ;;  %v1251_v55 = vmax.f32 %v1247_v7, 0.0  ;;  %vm1227_vm4 = vmor %vm1225_vm3, %vm1226_vm2  ;;  %vm1235_vm6 = vweird.f32 %v2550_v4  ;;  %1532 = vmatpush.msrb.mxu0 %v1454_v35  ;;  %v1469_v32 = vld [vmem:[%s2802_s7 + $0x130] sm:$0xff]  ;;  %1502 = vmatpush.msra.mxu3 %v1439_v48  ;;  %v1486_v7 = vld [vmem:[%s2802_s7 + $0x1b8] sm:$0xff] }
 0x721   :  { %v1218_v59 = vsel %vm1217_vm1, %v1846_v33, %v1214_v9  ;;  %v1221_v60 = vmul.f32 %v2548_v53, %v1220_v10  ;;  %1589 = vmatpush.msrb.mxu2 %v1487_v50  ;;  %v1468_v9 = vld [vmem:[%s2802_s7 + $0x128] sm:$0xff]  ;;  %1562 = vmatpush.msrb.mxu1 %v1469_v32  ;;  %v1406_v35 = vld [vmem:[#allocation5 + $0x38] sm:$0xff]  ;;  %v1407_v32 = vld [vmem:[#allocation5 + $0x40] sm:$0xff] }
 0x722   :  { %v1240_v63 = vmul.f32 %v1218_v59, %v1192_v12  ;;  %1797 = vmatmul.msk.f32.vlgmr.msrb.gmra.mxu3 %vm105_vm0, %v1251_v55  ;;  %1801 = vmatmul.msk.f32.vlgmr.msra.gmra.mxu0 %vm105_vm0, %v1251_v55  ;;  %v1485_v12 = vld [vmem:[%s2802_s7 + $0x1b0] sm:$0xff]  ;;  %v1467_v59 = vld [vmem:[%s2802_s7 + $0x120] sm:$0xff] }
 0x723   :  { %v1222_v2 = vmul.f32 0.5, %v1221_v60  ;;  %1805 = vmatmul.msk.f32.vlgmr.msra.gmra.mxu1 %vm105_vm0, %v1251_v55  ;;  %1809 = vmatmul.msk.f32.vlgmr.msra.gmra.mxu2 %vm105_vm0, %v1251_v55  ;;  %v1451_v55 = vld [vmem:[%s2802_s7 + $0xa0] sm:$0xff] }
 0x724   :  { %v1244_v14 = vmul.f32 %v1762_v61, %v1240_v63  ;;  %1590 = vmatpush.msrb.mxu2 %v1486_v7  ;;  %1563 = vmatpush.msrb.mxu1 %v1468_v9  ;;  %v1436_v61 = vld [vmem:[%s2802_s7 + $0x28] sm:$0xff]  ;;  %v1450_v63 = vld [vmem:[%s2802_s7 + $0x98] sm:$0xff]  ;;  %v1413_v9 = vld [vmem:[#allocation5 + $0x70] sm:$0xff] }
 0x725   :  { %v1223_v22 = vsub.f32 1.5, %v1222_v2  ;;  %v1465_v2 = vld [vmem:[%s2802_s7 + $0x110] sm:$0xff]  ;;  %v1412_v7 = vld [vmem:[#allocation5 + $0x68] sm:$0xff] }
 0x726   :  { %v2609_v24 = vpop.eup %1849  ;;  %v1248_v25 = vadd.f32 %v1766_v3, %v1244_v14  ;;  %1591 = vmatpush.msrb.mxu2 %v1485_v12  ;;  %1564 = vmatpush.msrb.mxu1 %v1467_v59  ;;  %v1435_v3 = vld [vmem:[%s2802_s7 + $0x20] sm:$0xff] }
 0x727   :  { %v1224_v41 = vmul.f32 %v2548_v53, %v1223_v22  ;;  %v1230_v20 = vmul.f32 %v2609_v24, %v2550_v4  ;;  %vm1236_vm5 = vweird.f32 %v2609_v24  ;;  %v1438_v4 = vld [vmem:[%s2802_s7 + $0x38] sm:$0xff]  ;;  %v1483_v14 = vld [vmem:[%s2802_s7 + $0x1a0] sm:$0xff] }
 0x728   :  { %v1252_v27 = vmax.f32 %v1248_v25, 0.0  ;;  %vm1237_vm7 = vmor %vm1235_vm6, %vm1236_vm5  ;;  %1503 = vmatpush.msra.mxu3 %v1438_v4  ;;  %1592 = vmatpush.msrb.mxu2 %v1484_v62  ;;  %v1463_v22 = vld [vmem:[%s2802_s7 + $0x100] sm:$0xff]  ;;  %v1432_v25 = vld [vmem:[%s2802_s7 + $0x8] sm:$0xff] }
 0x729   :  { %v1228_v33 = vsel %vm1227_vm4, %v2548_v53, %v1224_v41  ;;  %v1231_v36 = vmul.f32 %v2609_v24, %v1230_v20  ;;  %v1453_v53 = vld [vmem:[%s2802_s7 + $0xb0] sm:$0xff]  ;;  %1565 = vmatpush.msrb.mxu1 %v1466_v0  ;;  %v1479_v41 = vld [vmem:[%s2802_s7 + $0x180] sm:$0xff]  ;;  %v1400_v20 = vld [vmem:[#allocation5 + $0x8] sm:$0xff] }
 0x72a   :  { %v1241_v23 = vmul.f32 %v1228_v33, %v1193_v26  ;;  %1798 = vmatmul.msk.f32.gmra.mxu3 %vm105_vm0, %v1252_v27  ;;  %1802 = vmatmul.msk.f32.gmra.mxu0 %vm105_vm0, %v1252_v27  ;;  %v1401_v26 = vld [vmem:[#allocation5 + $0x10] sm:$0xff] }
 0x72b   :  { %v1232_v54 = vmul.f32 0.5, %v1231_v36  ;;  %1806 = vmatmul.msk.f32.gmra.mxu1 %vm105_vm0, %v1252_v27  ;;  %1810 = vmatmul.msk.f32.gmra.mxu2 %vm105_vm0, %v1252_v27 }
 0x72c   :  { %v1245_v38 = vmul.f32 %v1763_v30, %v1241_v23  ;;  %1533 = vmatpush.msrb.mxu0 %v1453_v53  ;;  %1504 = vmatpush.msra.mxu3 %v1437_v11 }
 0x72d   :  { %v1233_v42 = vsub.f32 1.5, %v1232_v54  ;;  %1566 = vmatpush.msrb.mxu1 %v1465_v2  ;;  %1593 = vmatpush.msrb.mxu2 %v1483_v14 }
 0x72e   :  { %v1249_v58 = vadd.f32 %v1767_v15, %v1245_v38  ;;  %1534 = vmatpush.msrb.mxu0 %v1452_v5  ;;  %1505 = vmatpush.msra.mxu3 %v1436_v61  ;;  %v1405_v15 = vld [vmem:[#allocation5 + $0x30] sm:$0xff]  ;;  %v1414_v61 = vld [vmem:[#allocation5 + $0x78] sm:$0xff] }
 0x72f   :  { %v1234_v45 = vmul.f32 %v2609_v24, %v1233_v42  ;;  %1567 = vmatpush.msrb.mxu1 %v1464_v13  ;;  %1594 = vmatpush.msrb.mxu2 %v1482_v40  ;;  %v1403_v42 = vld [vmem:[#allocation5 + $0x20] sm:$0xff] }
 0x730   :  { %v1253_v52 = vmax.f32 %v1249_v58, 0.0  ;;  %1535 = vmatpush.msrb.mxu0 %v1451_v55  ;;  %1506 = vmatpush.msra.mxu3 %v1435_v3  ;;  %v1408_v58 = vld [vmem:[#allocation5 + $0x48] sm:$0xff] }
 0x731   :  { %v1238_v49 = vsel %vm1237_vm7, %v2609_v24, %v1234_v45  ;;  %1568 = vmatpush.msrb.mxu1 %v1463_v22  ;;  %v1481_v24 = vld [vmem:[%s2802_s7 + $0x190] sm:$0xff] }
 0x732   :  { %v1242_v28 = vmul.f32 %v1238_v49, %v1194_v34  ;;  %1799 = vmatmul.msk.f32.gmra.mxu3 %vm105_vm0, %v1253_v52  ;;  %1803 = vmatmul.msk.f32.gmra.mxu0 %vm105_vm0, %v1253_v52  ;;  %v1409_v45 = vld [vmem:[#allocation5 + $0x50] sm:$0xff] }
 0x733   :  { %1807 = vmatmul.msk.f32.gmra.mxu1 %vm105_vm0, %v1253_v52  ;;  %1811 = vmatmul.msk.f32.gmra.mxu2 %vm105_vm0, %v1253_v52 }
 0x734   :  { %v1246_v10 = vmul.f32 %v1764_v19, %v1242_v28  ;;  %1536 = vmatpush.msrb.mxu0 %v1450_v63  ;;  %1507 = vmatpush.msra.mxu3 %v1434_v17  ;;  %v1410_v28 = vld [vmem:[#allocation5 + $0x58] sm:$0xff] }
 0x735   :  { %1595 = vmatpush.msrb.mxu2 %v1481_v24 }
 0x736   :  { %v1250_v60 = vadd.f32 %v1768_v8, %v1246_v10  ;;  %1537 = vmatpush.msrb.mxu0 %v1449_v1  ;;  %1508 = vmatpush.msra.mxu3 %v1433_v16 }
 0x737   :  { %1596 = vmatpush.msrb.mxu2 %v1480_v46 }
 0x738   :  { %v1254_v47 = vmax.f32 %v1250_v60, 0.0  ;;  %1538 = vmatpush.msrb.mxu0 %v1448_v6  ;;  %1509 = vmatpush.msra.mxu3 %v1432_v25  ;;  %v1411_v60 = vld [vmem:[#allocation5 + $0x60] sm:$0xff] }
 0x739   :  { %1597 = vmatpush.msrb.mxu2 %v1479_v41 }
 0x73a   :  { %1800 = vmatmul.msk.f32.gmra.mxu3 %vm105_vm0, %v1254_v47  ;;  %1804 = vmatmul.msk.f32.gmra.mxu0 %vm105_vm0, %v1254_v47 }
 0x73b   :  { %1808 = vmatmul.msk.f32.gmra.mxu1 %vm105_vm0, %v1254_v47  ;;  %1812 = vmatmul.msk.f32.gmra.mxu2 %vm105_vm0, %v1254_v47 }
 0x73c   :  { %1539 = vmatpush.msrb.mxu0 %v1447_v18  ;;  %1510 = vmatpush.msra.mxu3 %v1431_v21 }
 0x79f   :  { %v1329_v27 = vpop.f32.mrf.mxu0 }
 0x7a0   :  { %v1416_v33 = vmul.f32 %v1400_v20, %v1329_v27  ;;  %v1358_v36 = vpop.f32.mrf.mxu1 }
 0x7a1   :  { %v1417_v30 = vmul.f32 %v1401_v26, %v1358_v36 }
 0x7a2   :  { %1540 = vmatmul.f32.vlgmr.msrb.gmra.mxu0 %v1416_v33 }
 0x7a3   :  { %1569 = vmatmul.f32.vlgmr.msrb.gmra.mxu1 %v1417_v30 }
 0x7a5   :  { %v1300_v23 = vpop.f32.mrf.mxu3 }
 0x7a6   :  { %v1415_v43 = vmul.f32 %v1399_v37, %v1300_v23  ;;  %v1387_v54 = vpop.f32.mrf.mxu2 }
 0x7a7   :  { %v1418_v29 = vmul.f32 %v1402_v31, %v1387_v54  ;;  %v1332_v56 = vpop.f32.mrf.mxu0 }
 0x7a8   :  { %v1420_v38 = vmul.f32 %v1404_v51, %v1332_v56  ;;  %v1361_v39 = vpop.f32.mrf.mxu1  ;;  %1511 = vmatmul.f32.vlgmr.msra.gmra.mxu3 %v1415_v43 }
 0x7a9   :  { %v1421_v57 = vmul.f32 %v1405_v15, %v1361_v39  ;;  %1598 = vmatmul.f32.vlgmr.msrb.gmra.mxu2 %v1418_v29  ;;  %v1611_v15 = vld [vmem:[%s2803_s8] sm:$0x3] }
 0x7aa   :  { %1543 = vmatmul.f32.gmra.mxu0 %v1420_v38  ;;  %v1826_v29 = vld [vmem:[%s2804_s9] ss:$0 sm:$0xff] }
 0x7ab   :  { %1572 = vmatmul.f32.gmra.mxu1 %v1421_v57 }
 0x7ad   :  { %v1303_v44 = vpop.f32.mrf.mxu3 }
 0x7ae   :  { %v1419_v48 = vmul.f32 %v1403_v42, %v1303_v44  ;;  %v1390_v50 = vpop.f32.mrf.mxu2 }
 0x7af   :  { %v1422_v34 = vmul.f32 %v1406_v35, %v1390_v50  ;;  %v1335_v52 = vpop.f32.mrf.mxu0 }
 0x7b0   :  { %v1424_v49 = vmul.f32 %v1408_v58, %v1335_v52  ;;  %v1364_v19 = vpop.f32.mrf.mxu1  ;;  %1514 = vmatmul.f32.gmra.mxu3 %v1419_v48 }
 0x7b1   :  { %v1425_v53 = vmul.f32 %v1409_v45, %v1364_v19  ;;  %1601 = vmatmul.f32.gmra.mxu2 %v1422_v34 }
 0x7b2   :  { %1546 = vmatmul.f32.gmra.mxu0 %v1424_v49 }
 0x7b3   :  { %1575 = vmatmul.f32.gmra.mxu1 %v1425_v53 }
 0x7b5   :  { %v1306_v4 = vpop.f32.mrf.mxu3 }
 0x7b6   :  { %v1423_v8 = vmul.f32 %v1407_v32, %v1306_v4  ;;  %v1393_v5 = vpop.f32.mrf.mxu2 }
 0x7b7   :  { %v1426_v10 = vmul.f32 %v1410_v28, %v1393_v5  ;;  %v1338_v11 = vpop.f32.mrf.mxu0 }
 0x7b8   :  { %v1428_v12 = vmul.f32 %v1412_v7, %v1338_v11  ;;  %v1367_v55 = vpop.f32.mrf.mxu1  ;;  %1517 = vmatmul.f32.gmra.mxu3 %v1423_v8 }
 0x7b9   :  { %v1429_v59 = vmul.f32 %v1413_v9, %v1367_v55  ;;  %1604 = vmatmul.f32.gmra.mxu2 %v1426_v10 }
 0x7ba   :  { %1549 = vmatmul.f32.gmra.mxu0 %v1428_v12 }
 0x7bb   :  { %1578 = vmatmul.f32.gmra.mxu1 %v1429_v59 }
 0x7bd   :  { %v1309_v62 = vpop.f32.mrf.mxu3 }
 0x7be   :  { %v1427_v47 = vmul.f32 %v1411_v60, %v1309_v62  ;;  %v1396_v63 = vpop.f32.mrf.mxu2 }
 0x7bf   :  { %v1430_v0 = vmul.f32 %v1414_v61, %v1396_v63 }
 0x7c0   :  { %1520 = vmatmul.f32.gmra.mxu3 %v1427_v47 }
 0x7c1   :  { %1607 = vmatmul.f32.gmra.mxu2 %v1430_v0 }
 0x81f   :  { %v1541_v1 = vpop.f32.mrf.mxu0 }
 0x820   :  { %v1570_v2 = vpop.f32.mrf.mxu1 }
 0x827   :  { %v1544_v13 = vpop.f32.mrf.mxu0 }
 0x828   :  { %v1573_v14 = vpop.f32.mrf.mxu1 }
 0x82b   :  { %v1512_v3 = vpop.f32.mrf.mxu3 }
 0x82c   :  { %v1599_v6 = vpop.f32.mrf.mxu2  ;;  %v1542_v27 = vadd.f32 %v1541_v1, %v1512_v3 }
 0x82e   :  { %v1571_v23 = vadd.f32 %v1570_v2, %v1542_v27 }
 0x82f   :  { %v1547_v22 = vpop.f32.mrf.mxu0 }
 0x830   :  { %v1576_v40 = vpop.f32.mrf.mxu1  ;;  %v1600_v54 = vadd.f32 %v1599_v6, %v1571_v23 }
 0x833   :  { %v1515_v17 = vpop.f32.mrf.mxu3 }
 0x834   :  { %v1602_v18 = vpop.f32.mrf.mxu2  ;;  %v1545_v41 = vadd.f32 %v1544_v13, %v1515_v17 }
 0x836   :  { %v1574_v37 = vadd.f32 %v1573_v14, %v1545_v41 }
 0x837   :  { %v1550_v46 = vpop.f32.mrf.mxu0 }
 0x838   :  { %v1579_v26 = vpop.f32.mrf.mxu1  ;;  %v1603_v43 = vadd.f32 %v1602_v18, %v1574_v37 }
 0x83b   :  { %v1518_v16 = vpop.f32.mrf.mxu3 }
 0x83c   :  { %v1605_v24 = vpop.f32.mrf.mxu2  ;;  %v1548_v25 = vadd.f32 %v1547_v22, %v1518_v16 }
 0x83e   :  { %v1577_v33 = vadd.f32 %v1576_v40, %v1548_v25 }
 0x840   :  { %v1606_v51 = vadd.f32 %v1605_v24, %v1577_v33 }
 0x843   :  { %v1521_v21 = vpop.f32.mrf.mxu3 }
 0x844   :  { %v1551_v20 = vadd.f32 %v1550_v46, %v1521_v21  ;;  %v1608_v30 = vpop.f32.mrf.mxu2 }
 0x846   :  { %v1580_v36 = vadd.f32 %v1579_v26, %v1551_v20 }
 0x848   :  { %v1609_v31 = vadd.f32 %v1608_v30, %v1580_v36 }
 0x84a   :  { %1631 = vmatpush.msrb.mxu3 %v1609_v31 }
 0x84c   :  { %1632 = vmatpush.msrb.mxu3 %v1606_v51 }
 0x84e   :  { %1633 = vmatpush.msrb.mxu3 %v1603_v43 }
 0x850   :  { %1634 = vmatpush.msrb.mxu3 %v1600_v54 }
 0x851   :  { %1813 = vmatmul.msk.f32.vlgmr.msrb.gmra.mxu3 %vm105_vm0, %v1611_v15 }
 0x8d4   :  { %v1636_v56 = vpop.f32.mrf.mxu3 }
 0x8d5   :  { %v1637_v38 = vadd.f32 %v1826_v29, %v1636_v56 }
 0x8d7   :  { %1640 = vst.msk [vmem:[#allocation7] sm:$0x3] %vm1639_vm8, %v1637_v38 }
 0x8d8   :  { %1651 = dma.vmem_to_hbm [thread:$0]  %s1647_s21, 32, %s1649_s24, [#allocation4]  }
 0x8d9   :  { %1927 = dma.done.wait [#allocation4], 32  }
 0x8da   :  { %1928 = vsyncadd [#allocation4], 4294967264 }
 0x8db   :  { %1656 = vsyncpa [#allocation3], 1 }
 0x8dc   :  { %1657 = vsyncpa [#allocation6], 1 }
 0x8dd   :  { %1658 = vsyncpa [#allocation4], 1 }

</bundles_post_ra>
